<compile_context>
chip_gen: v7x
topology: tpu7x:2x2x1
jax: 0.10.0
libtpu: 0.0.40
codegen_flags: <defaults>
</compile_context>

<pallas_src>
import functools

import numpy as np
import jax
import jax.numpy as jnp
from jax.experimental import pallas as pl
from jax.experimental.pallas import tpu as pltpu

IN_DIM = 784        # 28*28 MNIST pixels
HIDDEN_1 = 256      # fc1 out
HIDDEN_2 = 256      # fc21/fc22 in
LATENT = 2
HEAD_W = 128        # fused [mean | log_var] head width (one lane tile)
HIDDEN_3 = 256      # fc3 out


def _round_up(x, m):
    return (x + m - 1) // m * m


def vae_kernel(x_ref, eps_ref,
               w1_ref, b1_ref, wh_ref, bh_ref,
               w3_ref, b3_ref, w4_ref, b4_ref,
               recon_ref, mean_ref, lgvar_ref):
    wdt = w1_ref.dtype                       # MXU input dtype (f32 or bf16)

    # encode: h1 = relu(x @ W1 + b1); cast of x to the MXU dtype is in-register.
    h1 = jnp.dot(x_ref[...].astype(wdt), w1_ref[...],
                 preferred_element_type=jnp.float32) + b1_ref[...]
    h1 = jnp.maximum(h1, 0.0)

    # fused latent heads: lanes [0,2) -> mean, lanes [2,4) -> log-variance.
    heads = jnp.dot(h1.astype(wdt), wh_ref[...],
                    preferred_element_type=jnp.float32) + bh_ref[...]
    mean = heads[:, 0:LATENT]                        # (tb, 2)
    lg_var = heads[:, LATENT:2 * LATENT]             # (tb, 2)

    # reparametrize: z = eps * exp(0.5*lg_var) + mean  (== eps*sqrt(exp(lg_var))+mean)
    std = jnp.exp(0.5 * lg_var)
    z = eps_ref[...] * std + mean                    # (tb, 2) f32

    # decode: h3 = relu(z @ W3 + b3) done as a 2-term VPU outer product (K == 2),
    # then recon = h3 @ W4 + b4 on the MXU.
    w3 = w3_ref[...].astype(jnp.float32)             # (2, 256)
    h3 = z[:, 0:1] * w3[0:1, :] + z[:, 1:2] * w3[1:2, :] + b3_ref[...]
    h3 = jnp.maximum(h3, 0.0)
    recon = jnp.dot(h3.astype(wdt), w4_ref[...],
                    preferred_element_type=jnp.float32) + b4_ref[...]

    recon_ref[...] = recon.astype(recon_ref.dtype)
    mean_ref[...] = mean
    lgvar_ref[...] = lg_var


def prepare_params(params, dtype=jnp.bfloat16):
    """One-time packing of params (off the hot path).

    Weights are stored (fan_in, fan_out).  fc21/fc22 are fused into one (256, 128)
    head: mean -> cols [0,2), log-var -> cols [2,4).  Weights may be bf16 (MXU fast
    path, default); biases stay f32 (added after the f32 MXU accumulation).
    """
    (w1, b1), (w21, b21), (w22, b22), (w3, b3), (w4, b4) = params

    w1_p = w1.astype(dtype)                                    # (784, 256)
    b1_p = b1.astype(jnp.float32).reshape(1, HIDDEN_1)

    wh_p = jnp.zeros((HIDDEN_2, HEAD_W), dtype)
    wh_p = wh_p.at[:, 0:LATENT].set(w21.astype(dtype))
    wh_p = wh_p.at[:, LATENT:2 * LATENT].set(w22.astype(dtype))
    bh_p = jnp.zeros((1, HEAD_W), jnp.float32)
    bh_p = bh_p.at[0, 0:LATENT].set(b21.astype(jnp.float32))
    bh_p = bh_p.at[0, LATENT:2 * LATENT].set(b22.astype(jnp.float32))

    w3_p = w3.astype(dtype)                                    # (2, 256)
    b3_p = b3.astype(jnp.float32).reshape(1, HIDDEN_3)
    w4_p = w4.astype(dtype)                                    # (256, 784)
    b4_p = b4.astype(jnp.float32).reshape(1, IN_DIM)

    return (w1_p, b1_p, wh_p, bh_p, w3_p, b3_p, w4_p, b4_p)


@functools.partial(jax.jit, static_argnames=("block_b", "out_dtype"))
def vae_forward(x, eps, prepped, *, block_b=1024, out_dtype=jnp.bfloat16):
    """x: (B, 784); eps: (B, 2) standard-normal draws. Returns (recon, mean, lg_var)."""
    (w1_p, b1_p, wh_p, bh_p, w3_p, b3_p, w4_p, b4_p) = prepped
    B = x.shape[0]
    eps = eps.astype(jnp.float32)

    tb = min(block_b, _round_up(B, 8))        # sublane-aligned batch tile
    grid = (pl.cdiv(B, tb),)                  # partial last tile handled by Pallas

    def act_spec(n):                          # batch-blocked, pipelined over the grid
        return pl.BlockSpec((tb, n), lambda i: (i, 0))

    def const_spec(shape):                    # weights / biases: VMEM-resident
        return pl.BlockSpec(shape, lambda i: (0, 0))

    flops = 2 * B * (IN_DIM * HIDDEN_1 + HIDDEN_2 * HEAD_W
                     + LATENT * HIDDEN_3 + HIDDEN_3 * IN_DIM)
    weight_bytes = sum(int(a.size) * a.dtype.itemsize
                       for a in (w1_p, b1_p, wh_p, bh_p, w3_p, b3_p, w4_p, b4_p))
    io_bytes = (int(x.size) * x.dtype.itemsize + int(eps.size) * 4
                + B * IN_DIM * jnp.dtype(out_dtype).itemsize + 2 * B * LATENT * 4)

    recon, mean, lg_var = pl.pallas_call(
        vae_kernel,
        grid=grid,
        in_specs=[
            act_spec(IN_DIM),                       # x      (tb, 784), native width
            act_spec(LATENT),                       # eps    (tb, 2)
            const_spec((IN_DIM, HIDDEN_1)),         # W1
            const_spec((1, HIDDEN_1)),              # b1
            const_spec((HIDDEN_2, HEAD_W)),         # fused head W
            const_spec((1, HEAD_W)),                # fused head b
            const_spec((LATENT, HIDDEN_3)),         # W3 (2, 256)
            const_spec((1, HIDDEN_3)),              # b3
            const_spec((HIDDEN_3, IN_DIM)),         # W4
            const_spec((1, IN_DIM)),                # b4
        ],
        out_specs=(act_spec(IN_DIM), act_spec(LATENT), act_spec(LATENT)),
        out_shape=(
            jax.ShapeDtypeStruct((B, IN_DIM), out_dtype),   # recon (bf16 by default)
            jax.ShapeDtypeStruct((B, LATENT), jnp.float32),  # mean
            jax.ShapeDtypeStruct((B, LATENT), jnp.float32),  # log-variance
        ),
        compiler_params=pltpu.CompilerParams(
            dimension_semantics=("parallel",),
            vmem_limit_bytes=48 * 1024 * 1024,      # stays under v7x's 64 MiB/TC
        ),
        cost_estimate=pl.CostEstimate(
            flops=flops,
            transcendentals=B * LATENT,
            bytes_accessed=weight_bytes + io_bytes,
        ),
    )(x, eps, w1_p, b1_p, wh_p, bh_p, w3_p, b3_p, w4_p, b4_p)

    return recon, mean, lg_var


def init_params(key):
    """PyTorch-style uniform(+-1/sqrt(fan_in)) init; weights stored (fan_in, fan_out)."""
    def linear(k, fan_in, fan_out):
        k1, k2 = jax.random.split(k)
        bound = 1.0 / np.sqrt(fan_in)
        w = jax.random.uniform(k1, (fan_in, fan_out), jnp.float32, -bound, bound)
        b = jax.random.uniform(k2, (fan_out,), jnp.float32, -bound, bound)
        return w, b

    k1, k2, k3, k4, k5 = jax.random.split(key, 5)
    return (
        linear(k1, IN_DIM, HIDDEN_1),    # fc1
        linear(k2, HIDDEN_2, LATENT),    # fc21
        linear(k3, HIDDEN_2, LATENT),    # fc22
        linear(k4, LATENT, HIDDEN_3),    # fc3
        linear(k5, HIDDEN_3, IN_DIM),    # fc4
    )


def vae_forward_ref(x, eps, params):
    """Pure-JAX reference mirroring the PyTorch module (eps passed explicitly)."""
    (w1, b1), (w21, b21), (w22, b22), (w3, b3), (w4, b4) = params
    dot = functools.partial(jnp.dot, precision=jax.lax.Precision.HIGHEST)
    h1 = jnp.maximum(dot(x, w1) + b1, 0.0)
    mean = dot(h1, w21) + b21
    lg_var = dot(h1, w22) + b22
    std = jnp.sqrt(jnp.exp(lg_var))          # torch: lg_var.exp().sqrt()
    z = eps * std + mean
    h3 = jnp.maximum(dot(z, w3) + b3, 0.0)
    return dot(h3, w4) + b4, mean, lg_var


if __name__ == "__main__":
    key = jax.random.PRNGKey(0)
    k_params, k_x, k_eps = jax.random.split(key, 3)

    B = 8
    params = init_params(k_params)
    x = jax.random.uniform(k_x, (B, IN_DIM), jnp.float32)       # MNIST-like input
    eps = jax.random.normal(k_eps, (B, LATENT), jnp.float32)    # explicit reparam noise

    recon_r, mean_r, lgvar_r = vae_forward_ref(x, eps, params)

    # --- f32-weight / f32-output path: tight check against the pure-JAX reference ---
    prepped_f32 = prepare_params(params, jnp.float32)
    recon, mean, lg_var = jax.block_until_ready(
        vae_forward(x, eps, prepped_f32, out_dtype=jnp.float32))
    np.testing.assert_allclose(np.asarray(recon), np.asarray(recon_r), rtol=5e-3, atol=5e-3)
    np.testing.assert_allclose(np.asarray(mean), np.asarray(mean_r), rtol=5e-3, atol=5e-3)
    np.testing.assert_allclose(np.asarray(lg_var), np.asarray(lgvar_r), rtol=5e-3, atol=5e-3)

    # --- multi-step grid + partial last tile (B=20, tb=8 -> grid of 3) ---
    B2 = 20
    x2 = jax.random.uniform(k_x, (B2, IN_DIM), jnp.float32)
    eps2 = jax.random.normal(k_eps, (B2, LATENT), jnp.float32)
    recon2_r, mean2_r, lgvar2_r = vae_forward_ref(x2, eps2, params)
    recon2, mean2, lgvar2 = jax.block_until_ready(
        vae_forward(x2, eps2, prepped_f32, block_b=8, out_dtype=jnp.float32))
    np.testing.assert_allclose(np.asarray(recon2), np.asarray(recon2_r), rtol=5e-3, atol=5e-3)
    np.testing.assert_allclose(np.asarray(mean2), np.asarray(mean2_r), rtol=5e-3, atol=5e-3)
    np.testing.assert_allclose(np.asarray(lgvar2), np.asarray(lgvar2_r), rtol=5e-3, atol=5e-3)

    # --- default fast path: bf16 weights + bf16 recon store (f32 accumulation kept) ---
    prepped_bf16 = prepare_params(params)                        # bf16 by default
    recon_b, mean_b, lgvar_b = jax.block_until_ready(vae_forward(x, eps, prepped_bf16))
    np.testing.assert_allclose(np.asarray(recon_b.astype(jnp.float32)),
                               np.asarray(recon_r), rtol=5e-2, atol=7.5e-2)
    np.testing.assert_allclose(np.asarray(mean_b), np.asarray(mean_r), rtol=5e-2, atol=7.5e-2)
    np.testing.assert_allclose(np.asarray(lgvar_b), np.asarray(lgvar_r), rtol=5e-2, atol=7.5e-2)

    print("KERNEL_OK")
</pallas_src>

<mosaic_0001>
module attributes {stable_mosaic.version = 11 : i64} {
  func.func @vae_kernel(%arg0: i32, %arg1: memref<8x784xf32, #tpu.memory_space<vmem>>, %arg2: memref<8x2xf32, #tpu.memory_space<vmem>>, %arg3: memref<784x256xf32, #tpu.memory_space<vmem>>, %arg4: memref<1x256xf32, #tpu.memory_space<vmem>>, %arg5: memref<256x128xf32, #tpu.memory_space<vmem>>, %arg6: memref<1x128xf32, #tpu.memory_space<vmem>>, %arg7: memref<2x256xf32, #tpu.memory_space<vmem>>, %arg8: memref<1x256xf32, #tpu.memory_space<vmem>>, %arg9: memref<256x784xf32, #tpu.memory_space<vmem>>, %arg10: memref<1x784xf32, #tpu.memory_space<vmem>>, %arg11: memref<8x784xf32, #tpu.memory_space<vmem>>, %arg12: memref<8x2xf32, #tpu.memory_space<vmem>>, %arg13: memref<8x2xf32, #tpu.memory_space<vmem>>) attributes {dimension_semantics = [#tpu.dimension_semantics<parallel>], iteration_bounds = array<i64: 1>, scalar_prefetch = 0 : i64, scratch_operands = 0 : i64, tpu.core_type = #tpu.core_type<tc>, window_params = [{transform_indices = @transform_0, window_bounds = array<i64: 8, 784>}, {transform_indices = @transform_1, window_bounds = array<i64: 8, 2>}, {pipeline_mode = #tpu.pipeline_mode<synchronous>, transform_indices = @transform_2, window_bounds = array<i64: 784, 256>}, {pipeline_mode = #tpu.pipeline_mode<synchronous>, transform_indices = @transform_3, window_bounds = array<i64: 1, 256>}, {pipeline_mode = #tpu.pipeline_mode<synchronous>, transform_indices = @transform_4, window_bounds = array<i64: 256, 128>}, {pipeline_mode = #tpu.pipeline_mode<synchronous>, transform_indices = @transform_5, window_bounds = array<i64: 1, 128>}, {pipeline_mode = #tpu.pipeline_mode<synchronous>, transform_indices = @transform_6, window_bounds = array<i64: 2, 256>}, {pipeline_mode = #tpu.pipeline_mode<synchronous>, transform_indices = @transform_7, window_bounds = array<i64: 1, 256>}, {pipeline_mode = #tpu.pipeline_mode<synchronous>, transform_indices = @transform_8, window_bounds = array<i64: 256, 784>}, {pipeline_mode = #tpu.pipeline_mode<synchronous>, transform_indices = @transform_9, window_bounds = array<i64: 1, 784>}, {transform_indices = @transform_10, window_bounds = array<i64: 8, 784>}, {transform_indices = @transform_11, window_bounds = array<i64: 8, 2>}, {transform_indices = @transform_12, window_bounds = array<i64: 8, 2>}]} {
    %c0 = arith.constant 0 : index
    %c0_0 = arith.constant 0 : index
    %0 = vector.load %arg1[%c0, %c0_0] : memref<8x784xf32, #tpu.memory_space<vmem>>, vector<8x784xf32>
    %c0_1 = arith.constant 0 : index
    %c0_2 = arith.constant 0 : index
    %1 = vector.load %arg3[%c0_1, %c0_2] : memref<784x256xf32, #tpu.memory_space<vmem>>, vector<784x256xf32>
    %cst = arith.constant dense<0.000000e+00> : vector<8x256xf32>
    %2 = tpu.matmul %0, %1, %cst {dimension_numbers = #tpu.dot_dimension_numbers<[1], [0], [0], [1], [0, 0, 1, 1], [], []>} : vector<8x784xf32>, vector<784x256xf32>, vector<8x256xf32> -> vector<8x256xf32>
    %c0_3 = arith.constant 0 : index
    %c0_4 = arith.constant 0 : index
    %3 = vector.load %arg4[%c0_3, %c0_4] : memref<1x256xf32, #tpu.memory_space<vmem>>, vector<1x256xf32>
    %4 = vector.broadcast %3 : vector<1x256xf32> to vector<8x256xf32>
    %5 = arith.addf %2, %4 : vector<8x256xf32>
    %cst_5 = arith.constant 0.000000e+00 : f32
    %6 = vector.broadcast %cst_5 : f32 to vector<8x256xf32>
    %7 = arith.maximumf %5, %6 : vector<8x256xf32>
    %c0_6 = arith.constant 0 : index
    %c0_7 = arith.constant 0 : index
    %8 = vector.load %arg5[%c0_6, %c0_7] : memref<256x128xf32, #tpu.memory_space<vmem>>, vector<256x128xf32>
    %cst_8 = arith.constant dense<0.000000e+00> : vector<8x128xf32>
    %9 = tpu.matmul %7, %8, %cst_8 {dimension_numbers = #tpu.dot_dimension_numbers<[1], [0], [0], [1], [0, 0, 1, 1], [], []>} : vector<8x256xf32>, vector<256x128xf32>, vector<8x128xf32> -> vector<8x128xf32>
    %c0_9 = arith.constant 0 : index
    %c0_10 = arith.constant 0 : index
    %10 = vector.load %arg6[%c0_9, %c0_10] : memref<1x128xf32, #tpu.memory_space<vmem>>, vector<1x128xf32>
    %11 = vector.broadcast %10 : vector<1x128xf32> to vector<8x128xf32>
    %12 = arith.addf %9, %11 : vector<8x128xf32>
    %13 = vector.extract_strided_slice %12 {offsets = [0, 0], sizes = [8, 2], strides = [1, 1]} : vector<8x128xf32> to vector<8x2xf32>
    %14 = vector.extract_strided_slice %12 {offsets = [0, 2], sizes = [8, 2], strides = [1, 1]} : vector<8x128xf32> to vector<8x2xf32>
    %cst_11 = arith.constant 5.000000e-01 : f32
    %15 = vector.broadcast %cst_11 : f32 to vector<8x2xf32>
    %16 = arith.mulf %15, %14 : vector<8x2xf32>
    %17 = math.exp %16 : vector<8x2xf32>
    %c0_12 = arith.constant 0 : index
    %c0_13 = arith.constant 0 : index
    %18 = vector.load %arg2[%c0_12, %c0_13] : memref<8x2xf32, #tpu.memory_space<vmem>>, vector<8x2xf32>
    %19 = arith.mulf %18, %17 : vector<8x2xf32>
    %20 = arith.addf %19, %13 : vector<8x2xf32>
    %c0_14 = arith.constant 0 : index
    %c0_15 = arith.constant 0 : index
    %21 = vector.load %arg7[%c0_14, %c0_15] : memref<2x256xf32, #tpu.memory_space<vmem>>, vector<2x256xf32>
    %22 = vector.extract_strided_slice %20 {offsets = [0, 0], sizes = [8, 1], strides = [1, 1]} : vector<8x2xf32> to vector<8x1xf32>
    %23 = vector.extract_strided_slice %21 {offsets = [0, 0], sizes = [1, 256], strides = [1, 1]} : vector<2x256xf32> to vector<1x256xf32>
    %24 = vector.broadcast %22 : vector<8x1xf32> to vector<8x256xf32>
    %25 = vector.broadcast %23 : vector<1x256xf32> to vector<8x256xf32>
    %26 = arith.mulf %24, %25 : vector<8x256xf32>
    %27 = vector.extract_strided_slice %20 {offsets = [0, 1], sizes = [8, 1], strides = [1, 1]} : vector<8x2xf32> to vector<8x1xf32>
    %28 = vector.extract_strided_slice %21 {offsets = [1, 0], sizes = [1, 256], strides = [1, 1]} : vector<2x256xf32> to vector<1x256xf32>
    %29 = vector.broadcast %27 : vector<8x1xf32> to vector<8x256xf32>
    %30 = vector.broadcast %28 : vector<1x256xf32> to vector<8x256xf32>
    %31 = arith.mulf %29, %30 : vector<8x256xf32>
    %32 = arith.addf %26, %31 : vector<8x256xf32>
    %c0_16 = arith.constant 0 : index
    %c0_17 = arith.constant 0 : index
    %33 = vector.load %arg8[%c0_16, %c0_17] : memref<1x256xf32, #tpu.memory_space<vmem>>, vector<1x256xf32>
    %34 = vector.broadcast %33 : vector<1x256xf32> to vector<8x256xf32>
    %35 = arith.addf %32, %34 : vector<8x256xf32>
    %cst_18 = arith.constant 0.000000e+00 : f32
    %36 = vector.broadcast %cst_18 : f32 to vector<8x256xf32>
    %37 = arith.maximumf %35, %36 : vector<8x256xf32>
    %c0_19 = arith.constant 0 : index
    %c0_20 = arith.constant 0 : index
    %38 = vector.load %arg9[%c0_19, %c0_20] : memref<256x784xf32, #tpu.memory_space<vmem>>, vector<256x784xf32>
    %cst_21 = arith.constant dense<0.000000e+00> : vector<8x784xf32>
    %39 = tpu.matmul %37, %38, %cst_21 {dimension_numbers = #tpu.dot_dimension_numbers<[1], [0], [0], [1], [0, 0, 1, 1], [], []>} : vector<8x256xf32>, vector<256x784xf32>, vector<8x784xf32> -> vector<8x784xf32>
    %c0_22 = arith.constant 0 : index
    %c0_23 = arith.constant 0 : index
    %40 = vector.load %arg10[%c0_22, %c0_23] : memref<1x784xf32, #tpu.memory_space<vmem>>, vector<1x784xf32>
    %41 = vector.broadcast %40 : vector<1x784xf32> to vector<8x784xf32>
    %42 = arith.addf %39, %41 : vector<8x784xf32>
    %c0_24 = arith.constant 0 : index
    %c0_25 = arith.constant 0 : index
    %43 = vector.load %arg11[%c0_24, %c0_25] : memref<8x784xf32, #tpu.memory_space<vmem>>, vector<8x784xf32>
    tpu.vector_store %arg11[%c0_24, %c0_25], %42 {strides = array<i32>} : memref<8x784xf32, #tpu.memory_space<vmem>>, vector<8x784xf32>,
    %c0_26 = arith.constant 0 : index
    %c0_27 = arith.constant 0 : index
    %44 = vector.load %arg12[%c0_26, %c0_27] : memref<8x2xf32, #tpu.memory_space<vmem>>, vector<8x2xf32>
    tpu.vector_store %arg12[%c0_26, %c0_27], %13 {strides = array<i32>} : memref<8x2xf32, #tpu.memory_space<vmem>>, vector<8x2xf32>,
    %c0_28 = arith.constant 0 : index
    %c0_29 = arith.constant 0 : index
    %45 = vector.load %arg13[%c0_28, %c0_29] : memref<8x2xf32, #tpu.memory_space<vmem>>, vector<8x2xf32>
    tpu.vector_store %arg13[%c0_28, %c0_29], %14 {strides = array<i32>} : memref<8x2xf32, #tpu.memory_space<vmem>>, vector<8x2xf32>,
    return
  }
  func.func @transform_0(%arg0: i32) -> (i32, i32) {
    %c0_i32 = arith.constant 0 : i32
    %c0_i32_0 = arith.constant 0 : i32
    return %arg0, %c0_i32 : i32, i32
  }
  func.func @transform_1(%arg0: i32) -> (i32, i32) {
    %c0_i32 = arith.constant 0 : i32
    %c0_i32_0 = arith.constant 0 : i32
    return %arg0, %c0_i32 : i32, i32
  }
  func.func @transform_2(%arg0: i32) -> (i32, i32) {
    %c0_i32 = arith.constant 0 : i32
    %c0_i32_0 = arith.constant 0 : i32
    %c0_i32_1 = arith.constant 0 : i32
    return %c0_i32, %c0_i32_0 : i32, i32
  }
  func.func @transform_3(%arg0: i32) -> (i32, i32) {
    %c0_i32 = arith.constant 0 : i32
    %c0_i32_0 = arith.constant 0 : i32
    %c0_i32_1 = arith.constant 0 : i32
    return %c0_i32, %c0_i32_0 : i32, i32
  }
  func.func @transform_4(%arg0: i32) -> (i32, i32) {
    %c0_i32 = arith.constant 0 : i32
    %c0_i32_0 = arith.constant 0 : i32
    %c0_i32_1 = arith.constant 0 : i32
    return %c0_i32, %c0_i32_0 : i32, i32
  }
  func.func @transform_5(%arg0: i32) -> (i32, i32) {
    %c0_i32 = arith.constant 0 : i32
    %c0_i32_0 = arith.constant 0 : i32
    %c0_i32_1 = arith.constant 0 : i32
    return %c0_i32, %c0_i32_0 : i32, i32
  }
  func.func @transform_6(%arg0: i32) -> (i32, i32) {
    %c0_i32 = arith.constant 0 : i32
    %c0_i32_0 = arith.constant 0 : i32
    %c0_i32_1 = arith.constant 0 : i32
    return %c0_i32, %c0_i32_0 : i32, i32
  }
  func.func @transform_7(%arg0: i32) -> (i32, i32) {
    %c0_i32 = arith.constant 0 : i32
    %c0_i32_0 = arith.constant 0 : i32
    %c0_i32_1 = arith.constant 0 : i32
    return %c0_i32, %c0_i32_0 : i32, i32
  }
  func.func @transform_8(%arg0: i32) -> (i32, i32) {
    %c0_i32 = arith.constant 0 : i32
    %c0_i32_0 = arith.constant 0 : i32
    %c0_i32_1 = arith.constant 0 : i32
    return %c0_i32, %c0_i32_0 : i32, i32
  }
  func.func @transform_9(%arg0: i32) -> (i32, i32) {
    %c0_i32 = arith.constant 0 : i32
    %c0_i32_0 = arith.constant 0 : i32
    %c0_i32_1 = arith.constant 0 : i32
    return %c0_i32, %c0_i32_0 : i32, i32
  }
  func.func @transform_10(%arg0: i32) -> (i32, i32) {
    %c0_i32 = arith.constant 0 : i32
    %c0_i32_0 = arith.constant 0 : i32
    return %arg0, %c0_i32 : i32, i32
  }
  func.func @transform_11(%arg0: i32) -> (i32, i32) {
    %c0_i32 = arith.constant 0 : i32
    %c0_i32_0 = arith.constant 0 : i32
    return %arg0, %c0_i32 : i32, i32
  }
  func.func @transform_12(%arg0: i32) -> (i32, i32) {
    %c0_i32 = arith.constant 0 : i32
    %c0_i32_0 = arith.constant 0 : i32
    return %arg0, %c0_i32 : i32, i32
  }
}

</mosaic_0001>

<bundles_post_ra>
// kernel: vae_forward.1
= control target key start
LH: loop header
LB: loop body
LE: loop exit
PB: predicated region body
PF: predicated region fallthrough
CT: control target
= control target key end

     0   :  { %s3420_s0 = inlined_call_operand.vmem [shape: f32[8,784], index: 0, kind: input, shape index: {}]   ;;  %s3421_s1 = inlined_call_operand.vmem [shape: f32[8,2], index: 1, kind: input, shape index: {}]   ;;  %s3422_s2 = inlined_call_operand.vmem [shape: f32[784,256], index: 2, kind: input, shape index: {}]   ;;  %s3423_s3 = inlined_call_operand.vmem [shape: f32[1,256], index: 3, kind: input, shape index: {}]   ;;  %s3424_s4 = inlined_call_operand.vmem [shape: f32[256,128], index: 4, kind: input, shape index: {}]   ;;  %s3425_s5 = inlined_call_operand.vmem [shape: f32[1,128], index: 5, kind: input, shape index: {}]   ;;  %s3426_s6 = inlined_call_operand.vmem [shape: f32[2,256], index: 6, kind: input, shape index: {}]   ;;  %s3427_s7 = inlined_call_operand.vmem [shape: f32[1,256], index: 7, kind: input, shape index: {}]   ;;  %s3428_s8 = inlined_call_operand.vmem [shape: f32[256,784], index: 8, kind: input, shape index: {}]   ;;  %s3429_s9 = inlined_call_operand.vmem [shape: f32[1,784], index: 9, kind: input, shape index: {}]   ;;  %s3430_s10 = inlined_call_operand.hbm [shape: f32[8,784], index: 10, kind: output, shape index: {0}]   ;;  %s3431_s11 = inlined_call_operand.vmem [shape: f32[8,2], index: 11, kind: output, shape index: {1}]   ;;  %s3432_s12 = inlined_call_operand.vmem [shape: f32[8,2], index: 12, kind: output, shape index: {2}]  }
   0x1   :  { %v47_v0 = vld [vmem:[%s3422_s2 + $0x8] sm:$0xff]  ;;  %v49_v1 = vld [vmem:[%s3422_s2 + $0x18] sm:$0xff]  ;;  %v46_v2 = vld [vmem:[%s3422_s2] sm:$0xff] }
   0x2   :  { %v1384_v3 = vpack.c.bf16 %v49_v1, %v47_v0  ;;  %v48_v4 = vld [vmem:[%s3422_s2 + $0x10] sm:$0xff]  ;;  %v51_v5 = vld [vmem:[%s3422_s2 + $0x28] sm:$0xff]  ;;  %v53_v6 = vld [vmem:[%s3422_s2 + $0x38] sm:$0xff] }
   0x3   :  { %v1386_v7 = vpack.c.bf16 %v48_v4, %v46_v2  ;;  %v1388_v8 = vpack.c.bf16 %v53_v6, %v51_v5  ;;  %v50_v9 = vld [vmem:[%s3422_s2 + $0x20] sm:$0xff]  ;;  %v52_v10 = vld [vmem:[%s3422_s2 + $0x30] sm:$0xff]  ;;  %v55_v11 = vld [vmem:[%s3422_s2 + $0x48] sm:$0xff] }
   0x4   :  { %1385 = vmatprep.subr.bf16.mxu0 %v1384_v3  ;;  %v57_v12 = vld [vmem:[%s3422_s2 + $0x58] sm:$0xff]  ;;  %v1390_v13 = vpack.c.bf16 %v52_v10, %v50_v9  ;;  %v54_v15 = vld [vmem:[%s3422_s2 + $0x40] sm:$0xff]  ;;  %v56_v16 = vld [vmem:[%s3422_s2 + $0x50] sm:$0xff] }
   0x5   :  { %1387 = vmatpush1.bf16.msra.mxu0 %v1386_v7  ;;  %v1392_v14 = vpack.c.bf16 %v57_v12, %v55_v11  ;;  %v59_v17 = vld [vmem:[%s3422_s2 + $0x68] sm:$0xff]  ;;  %v61_v18 = vld [vmem:[%s3422_s2 + $0x78] sm:$0xff]  ;;  %v1394_v19 = vpack.c.bf16 %v56_v16, %v54_v15  ;;  %v58_v21 = vld [vmem:[%s3422_s2 + $0x60] sm:$0xff] }
   0x6   :  { %1389 = vmatprep.subr.bf16.mxu0 %v1388_v8  ;;  %v1396_v20 = vpack.c.bf16 %v61_v18, %v59_v17  ;;  %v60_v22 = vld [vmem:[%s3422_s2 + $0x70] sm:$0xff]  ;;  %v63_v23 = vld [vmem:[%s3422_s2 + $0x88] sm:$0xff]  ;;  %v65_v24 = vld [vmem:[%s3422_s2 + $0x98] sm:$0xff] }
   0x7   :  { %v1398_v25 = vpack.c.bf16 %v60_v22, %v58_v21  ;;  %v1400_v26 = vpack.c.bf16 %v65_v24, %v63_v23  ;;  %v62_v27 = vld [vmem:[%s3422_s2 + $0x80] sm:$0xff]  ;;  %v64_v28 = vld [vmem:[%s3422_s2 + $0x90] sm:$0xff]  ;;  %v67_v29 = vld [vmem:[%s3422_s2 + $0xa8] sm:$0xff] }
   0x8   :  { %v69_v30 = vld [vmem:[%s3422_s2 + $0xb8] sm:$0xff]  ;;  %v1402_v31 = vpack.c.bf16 %v64_v28, %v62_v27  ;;  %v66_v33 = vld [vmem:[%s3422_s2 + $0xa0] sm:$0xff]  ;;  %v68_v34 = vld [vmem:[%s3422_s2 + $0xb0] sm:$0xff] }
   0x9   :  { %1391 = vmatpush1.bf16.msra.mxu0 %v1390_v13  ;;  %v1404_v32 = vpack.c.bf16 %v69_v30, %v67_v29  ;;  %v71_v35 = vld [vmem:[%s3422_s2 + $0xc8] sm:$0xff]  ;;  %v73_v36 = vld [vmem:[%s3422_s2 + $0xd8] sm:$0xff]  ;;  %v1406_v37 = vpack.c.bf16 %v68_v34, %v66_v33  ;;  %v70_v39 = vld [vmem:[%s3422_s2 + $0xc0] sm:$0xff] }
   0xa   :  { %1393 = vmatprep.subr.bf16.mxu0 %v1392_v14  ;;  %v1408_v38 = vpack.c.bf16 %v73_v36, %v71_v35  ;;  %v72_v40 = vld [vmem:[%s3422_s2 + $0xd0] sm:$0xff]  ;;  %v40_v41 = vld [vmem:[%s3420_s0 + $0x8] sm:$0xff]  ;;  %v77_v43 = vld [vmem:[%s3422_s2 + $0xf8] sm:$0xff] }
   0xb   :  { %v75_v42 = vld [vmem:[%s3422_s2 + $0xe8] sm:$0xff]  ;;  %322 = vmatprep.mubr.f32.mxu0 %v40_v41  ;;  %v1410_v44 = vpack.c.bf16 %v72_v40, %v70_v39  ;;  %v74_v46 = vld [vmem:[%s3422_s2 + $0xe0] sm:$0xff]  ;;  %v76_v47 = vld [vmem:[%s3422_s2 + $0xf0] sm:$0xff] }
   0xc   :  { %v1412_v45 = vpack.c.bf16 %v77_v43, %v75_v42  ;;  %v79_v48 = vld [vmem:[%s3422_s2 + $0x108] sm:$0xff]  ;;  %v81_v49 = vld [vmem:[%s3422_s2 + $0x118] sm:$0xff]  ;;  %v1414_v50 = vpack.c.bf16 %v76_v47, %v74_v46  ;;  %v78_v52 = vld [vmem:[%s3422_s2 + $0x100] sm:$0xff] }
   0xd   :  { %1395 = vmatpush1.bf16.msra.mxu0 %v1394_v19  ;;  %v1416_v51 = vpack.c.bf16 %v81_v49, %v79_v48  ;;  %v80_v53 = vld [vmem:[%s3422_s2 + $0x110] sm:$0xff]  ;;  %v83_v54 = vld [vmem:[%s3422_s2 + $0x128] sm:$0xff]  ;;  %v85_v55 = vld [vmem:[%s3422_s2 + $0x138] sm:$0xff] }
   0xe   :  { %1397 = vmatprep.subr.bf16.mxu0 %v1396_v20  ;;  %v1418_v56 = vpack.c.bf16 %v80_v53, %v78_v52  ;;  %v1420_v57 = vpack.c.bf16 %v85_v55, %v83_v54  ;;  %v82_v58 = vld [vmem:[%s3422_s2 + $0x120] sm:$0xff]  ;;  %v84_v59 = vld [vmem:[%s3422_s2 + $0x130] sm:$0xff]  ;;  %v87_v60 = vld [vmem:[%s3422_s2 + $0x148] sm:$0xff] }
   0xf   :  { %v89_v61 = vld [vmem:[%s3422_s2 + $0x158] sm:$0xff]  ;;  %v1422_v62 = vpack.c.bf16 %v84_v59, %v82_v58  ;;  %v86_v0 = vld [vmem:[%s3422_s2 + $0x140] sm:$0xff]  ;;  %v88_v1 = vld [vmem:[%s3422_s2 + $0x150] sm:$0xff] }
  0x10   :  { %v1424_v63 = vpack.c.bf16 %v89_v61, %v87_v60  ;;  %v91_v2 = vld [vmem:[%s3422_s2 + $0x168] sm:$0xff]  ;;  %v93_v3 = vld [vmem:[%s3422_s2 + $0x178] sm:$0xff]  ;;  %v1426_v4 = vpack.c.bf16 %v88_v1, %v86_v0  ;;  %v90_v6 = vld [vmem:[%s3422_s2 + $0x160] sm:$0xff] }
  0x11   :  { %1399 = vmatpush1.bf16.msra.mxu0 %v1398_v25  ;;  %v1428_v5 = vpack.c.bf16 %v93_v3, %v91_v2  ;;  %v92_v7 = vld [vmem:[%s3422_s2 + $0x170] sm:$0xff]  ;;  %v95_v8 = vld [vmem:[%s3422_s2 + $0x188] sm:$0xff]  ;;  %v97_v9 = vld [vmem:[%s3422_s2 + $0x198] sm:$0xff] }
  0x12   :  { %1401 = vmatprep.subr.bf16.mxu0 %v1400_v26  ;;  %v1430_v10 = vpack.c.bf16 %v92_v7, %v90_v6  ;;  %v1432_v11 = vpack.c.bf16 %v97_v9, %v95_v8  ;;  %v94_v12 = vld [vmem:[%s3422_s2 + $0x180] sm:$0xff]  ;;  %v96_v13 = vld [vmem:[%s3422_s2 + $0x190] sm:$0xff]  ;;  %v99_v14 = vld [vmem:[%s3422_s2 + $0x1a8] sm:$0xff] }
  0x13   :  { %v101_v15 = vld [vmem:[%s3422_s2 + $0x1b8] sm:$0xff]  ;;  %v1434_v16 = vpack.c.bf16 %v96_v13, %v94_v12  ;;  %v98_v18 = vld [vmem:[%s3422_s2 + $0x1a0] sm:$0xff]  ;;  %v100_v19 = vld [vmem:[%s3422_s2 + $0x1b0] sm:$0xff] }
  0x14   :  { %v1436_v17 = vpack.c.bf16 %v101_v15, %v99_v14  ;;  %v103_v20 = vld [vmem:[%s3422_s2 + $0x1c8] sm:$0xff]  ;;  %v105_v21 = vld [vmem:[%s3422_s2 + $0x1d8] sm:$0xff]  ;;  %v1438_v22 = vpack.c.bf16 %v100_v19, %v98_v18  ;;  %v102_v24 = vld [vmem:[%s3422_s2 + $0x1c0] sm:$0xff] }
  0x15   :  { %1403 = vmatpush1.bf16.msra.mxu0 %v1402_v31  ;;  %v1440_v23 = vpack.c.bf16 %v105_v21, %v103_v20  ;;  %v104_v25 = vld [vmem:[%s3422_s2 + $0x1d0] sm:$0xff]  ;;  %v107_v26 = vld [vmem:[%s3422_s2 + $0x1e8] sm:$0xff]  ;;  %v109_v27 = vld [vmem:[%s3422_s2 + $0x1f8] sm:$0xff] }
  0x16   :  { %1405 = vmatprep.subr.bf16.mxu0 %v1404_v32  ;;  %v1442_v28 = vpack.c.bf16 %v104_v25, %v102_v24  ;;  %v1444_v29 = vpack.c.bf16 %v109_v27, %v107_v26  ;;  %v106_v30 = vld [vmem:[%s3422_s2 + $0x1e0] sm:$0xff]  ;;  %v108_v31 = vld [vmem:[%s3422_s2 + $0x1f0] sm:$0xff]  ;;  %v111_v32 = vld [vmem:[%s3422_s2 + $0x208] sm:$0xff] }
  0x17   :  { %v113_v33 = vld [vmem:[%s3422_s2 + $0x218] sm:$0xff]  ;;  %v1446_v34 = vpack.c.bf16 %v108_v31, %v106_v30  ;;  %v110_v36 = vld [vmem:[%s3422_s2 + $0x200] sm:$0xff]  ;;  %v119_v46 = vld [vmem:[%s3422_s2 + $0x248] sm:$0xff] }
  0x18   :  { %v1448_v35 = vpack.c.bf16 %v113_v33, %v111_v32  ;;  %v117_v39 = vld [vmem:[%s3422_s2 + $0x238] sm:$0xff]  ;;  %v39_v40 = vld [vmem:[%s3420_s0] sm:$0xff] }
  0x19   :  { %1407 = vmatpush1.bf16.msra.mxu0 %v1406_v37  ;;  %v112_v37 = vld [vmem:[%s3422_s2 + $0x210] sm:$0xff]  ;;  %v114_v43 = vld [vmem:[%s3422_s2 + $0x220] sm:$0xff]  ;;  %v121_v47 = vld [vmem:[%s3422_s2 + $0x258] sm:$0xff] }
  0x1a   :  { %1409 = vmatprep.subr.bf16.mxu0 %v1408_v38  ;;  %v115_v38 = vld [vmem:[%s3422_s2 + $0x228] sm:$0xff]  ;;  %v1450_v41 = vpack.c.bf16 %v112_v37, %v110_v36 }
  0x1b   :  { %v1452_v42 = vpack.c.bf16 %v117_v39, %v115_v38 }
  0x1d   :  { %1411 = vmatpush1.bf16.msra.mxu0 %v1410_v44  ;;  %v116_v44 = vld [vmem:[%s3422_s2 + $0x230] sm:$0xff] }
  0x1e   :  { %1413 = vmatprep.subr.bf16.mxu0 %v1412_v45  ;;  %v42_v45 = vld [vmem:[%s3420_s0 + $0x18] sm:$0xff] }
  0x21   :  { %1415 = vmatpush1.bf16.msra.mxu0 %v1414_v50 }
  0x22   :  { %1417 = vmatprep.subr.bf16.mxu0 %v1416_v51 }
  0x25   :  { %1419 = vmatpush1.bf16.msra.mxu0 %v1418_v56 }
  0x26   :  { %1421 = vmatprep.subr.bf16.mxu0 %v1420_v57 }
  0x29   :  { %1423 = vmatpush1.bf16.msra.mxu0 %v1422_v62 }
  0x2a   :  { %1425 = vmatprep.subr.bf16.mxu0 %v1424_v63 }
  0x2d   :  { %1427 = vmatpush1.bf16.msra.mxu0 %v1426_v4 }
  0x2e   :  { %1429 = vmatprep.subr.bf16.mxu0 %v1428_v5 }
  0x31   :  { %1431 = vmatpush1.bf16.msra.mxu0 %v1430_v10 }
  0x32   :  { %1433 = vmatprep.subr.bf16.mxu0 %v1432_v11 }
  0x35   :  { %1435 = vmatpush1.bf16.msra.mxu0 %v1434_v16 }
  0x36   :  { %1437 = vmatprep.subr.bf16.mxu0 %v1436_v17 }
  0x39   :  { %1439 = vmatpush1.bf16.msra.mxu0 %v1438_v22 }
  0x3a   :  { %1441 = vmatprep.subr.bf16.mxu0 %v1440_v23 }
  0x3d   :  { %1443 = vmatpush1.bf16.msra.mxu0 %v1442_v28 }
  0x3e   :  { %1445 = vmatprep.subr.bf16.mxu0 %v1444_v29 }
  0x41   :  { %1447 = vmatpush1.bf16.msra.mxu0 %v1446_v34 }
  0x42   :  { %1449 = vmatprep.subr.bf16.mxu0 %v1448_v35 }
  0x43   :  { %18 = vsyncpa [#allocation3], 0  ;;  %v1454_v48 = vpack.c.bf16 %v116_v44, %v114_v43  ;;  %v1456_v49 = vpack.c.bf16 %v121_v47, %v119_v46  ;;  %v118_v50 = vld [vmem:[%s3422_s2 + $0x240] sm:$0xff]  ;;  %v120_v51 = vld [vmem:[%s3422_s2 + $0x250] sm:$0xff]  ;;  %vm254_vm0 = vcmask 130048   ;;  %vm1283_vm1 = vcmask 15360  }
  0x44   :  { %323 = vmatmul.mubr.f32.vlgmr.msra.gmra.mrb[0].mxu0 %v39_v40  ;;  %v123_v52 = vld [vmem:[%s3422_s2 + $0x268] sm:$0xff]  ;;  %v125_v53 = vld [vmem:[%s3422_s2 + $0x278] sm:$0xff]  ;;  %v1458_v54 = vpack.c.bf16 %v120_v51, %v118_v50  ;;  %v122_v56 = vld [vmem:[%s3422_s2 + $0x260] sm:$0xff] }
  0x45   :  { %1451 = vmatpush1.bf16.msra.mxu0 %v1450_v41  ;;  %393 = vmatprep.mubr.f32.mxu0 %v42_v45  ;;  %v1460_v55 = vpack.c.bf16 %v125_v53, %v123_v52  ;;  %v124_v57 = vld [vmem:[%s3422_s2 + $0x270] sm:$0xff]  ;;  %v127_v58 = vld [vmem:[%s3422_s2 + $0x288] sm:$0xff]  ;;  %v129_v59 = vld [vmem:[%s3422_s2 + $0x298] sm:$0xff] }
  0x46   :  { %1453 = vmatprep.subr.bf16.mxu0 %v1452_v42  ;;  %v126_v60 = vld [vmem:[%s3422_s2 + $0x280] sm:$0xff]  ;;  %v128_v61 = vld [vmem:[%s3422_s2 + $0x290] sm:$0xff]  ;;  %v561_v63 = vld [vmem:[%s3424_s4 + $0x88] sm:$0xff]  ;;  %v1462_v1 = vpack.c.bf16 %v124_v57, %v122_v56  ;;  %v1464_v6 = vpack.c.bf16 %v129_v59, %v127_v58 }
  0x47   :  { %v560_v62 = vld [vmem:[%s3424_s4 + $0x80] sm:$0xff]  ;;  %v545_v3 = vld [vmem:[%s3424_s4 + $0x8] sm:$0xff]  ;;  %v562_v4 = vld [vmem:[%s3424_s4 + $0x90] sm:$0xff]  ;;  %v1466_v16 = vpack.c.bf16 %v128_v61, %v126_v60 }
  0x48   :  { %v544_v0 = vld [vmem:[%s3424_s4] sm:$0xff]  ;;  %v1580_v2 = vpack.c.bf16 %v561_v63, %v560_v62  ;;  %v563_v5 = vld [vmem:[%s3424_s4 + $0x98] sm:$0xff]  ;;  %v546_v9 = vld [vmem:[%s3424_s4 + $0x10] sm:$0xff] }
  0x49   :  { %1455 = vmatpush1.bf16.msra.mxu0 %v1454_v48  ;;  %v1582_v7 = vpack.c.bf16 %v545_v3, %v544_v0  ;;  %v1584_v8 = vpack.c.bf16 %v563_v5, %v562_v4  ;;  %v547_v10 = vld [vmem:[%s3424_s4 + $0x18] sm:$0xff]  ;;  %v564_v11 = vld [vmem:[%s3424_s4 + $0xa0] sm:$0xff]  ;;  %v131_v12 = vld [vmem:[%s3422_s2 + $0x2a8] sm:$0xff] }
  0x4a   :  { %1457 = vmatprep.subr.bf16.mxu0 %v1456_v49  ;;  %v133_v13 = vld [vmem:[%s3422_s2 + $0x2b8] sm:$0xff]  ;;  %1581 = vmatprep.subr.bf16.mxu1 %v1580_v2  ;;  %v565_v14 = vld [vmem:[%s3424_s4 + $0xa8] sm:$0xff]  ;;  %v1586_v15 = vpack.c.bf16 %v547_v10, %v546_v9  ;;  %v130_v17 = vld [vmem:[%s3422_s2 + $0x2a0] sm:$0xff] }
  0x4b   :  { %1583 = vmatpush3.bf16.msra.mxu1 %v1582_v7  ;;  %v1588_v18 = vpack.c.bf16 %v565_v14, %v564_v11  ;;  %v548_v19 = vld [vmem:[%s3424_s4 + $0x20] sm:$0xff]  ;;  %v549_v20 = vld [vmem:[%s3424_s4 + $0x28] sm:$0xff]  ;;  %v1468_v21 = vpack.c.bf16 %v133_v13, %v131_v12  ;;  %v132_v22 = vld [vmem:[%s3422_s2 + $0x2b0] sm:$0xff] }
  0x4c   :  { %1585 = vmatprep.subr.bf16.mxu1 %v1584_v8  ;;  %v566_v23 = vld [vmem:[%s3424_s4 + $0xb0] sm:$0xff]  ;;  %v567_v24 = vld [vmem:[%s3424_s4 + $0xb8] sm:$0xff]  ;;  %v135_v25 = vld [vmem:[%s3422_s2 + $0x2c8] sm:$0xff]  ;;  %v1590_v27 = vpack.c.bf16 %v549_v20, %v548_v19  ;;  %v1470_v28 = vpack.c.bf16 %v132_v22, %v130_v17 }
  0x4d   :  { %1459 = vmatpush1.bf16.msra.mxu0 %v1458_v54  ;;  %v137_v26 = vld [vmem:[%s3422_s2 + $0x2d8] sm:$0xff]  ;;  %v134_v29 = vld [vmem:[%s3422_s2 + $0x2c0] sm:$0xff]  ;;  %v1592_v30 = vpack.c.bf16 %v567_v24, %v566_v23  ;;  %v550_v31 = vld [vmem:[%s3424_s4 + $0x30] sm:$0xff] }
  0x4e   :  { %1461 = vmatprep.subr.bf16.mxu0 %v1460_v55  ;;  %v551_v32 = vld [vmem:[%s3424_s4 + $0x38] sm:$0xff]  ;;  %v1472_v33 = vpack.c.bf16 %v137_v26, %v135_v25  ;;  %v136_v34 = vld [vmem:[%s3422_s2 + $0x2d0] sm:$0xff]  ;;  %v568_v35 = vld [vmem:[%s3424_s4 + $0xc0] sm:$0xff] }
  0x4f   :  { %1587 = vmatpush3.bf16.msra.mxu1 %v1586_v15  ;;  %v569_v36 = vld [vmem:[%s3424_s4 + $0xc8] sm:$0xff]  ;;  %v141_v38 = vld [vmem:[%s3422_s2 + $0x2f8] sm:$0xff]  ;;  %v1594_v39 = vpack.c.bf16 %v551_v32, %v550_v31  ;;  %v1474_v40 = vpack.c.bf16 %v136_v34, %v134_v29  ;;  %v138_v41 = vld [vmem:[%s3422_s2 + $0x2e0] sm:$0xff] }
  0x50   :  { %1589 = vmatprep.subr.bf16.mxu1 %v1588_v18  ;;  %v139_v37 = vld [vmem:[%s3422_s2 + $0x2e8] sm:$0xff]  ;;  %v1596_v42 = vpack.c.bf16 %v569_v36, %v568_v35  ;;  %v552_v43 = vld [vmem:[%s3424_s4 + $0x40] sm:$0xff]  ;;  %v140_v46 = vld [vmem:[%s3422_s2 + $0x2f0] sm:$0xff] }
  0x51   :  { %1463 = vmatpush1.bf16.msra.mxu0 %v1462_v1  ;;  %v553_v44 = vld [vmem:[%s3424_s4 + $0x48] sm:$0xff]  ;;  %v1476_v45 = vpack.c.bf16 %v141_v38, %v139_v37  ;;  %v570_v47 = vld [vmem:[%s3424_s4 + $0xd0] sm:$0xff]  ;;  %v571_v48 = vld [vmem:[%s3424_s4 + $0xd8] sm:$0xff]  ;;  %v1478_v52 = vpack.c.bf16 %v140_v46, %v138_v41 }
  0x52   :  { %1465 = vmatprep.subr.bf16.mxu0 %v1464_v6  ;;  %v143_v49 = vld [vmem:[%s3422_s2 + $0x308] sm:$0xff]  ;;  %v145_v50 = vld [vmem:[%s3422_s2 + $0x318] sm:$0xff]  ;;  %v1598_v51 = vpack.c.bf16 %v553_v44, %v552_v43  ;;  %v142_v53 = vld [vmem:[%s3422_s2 + $0x300] sm:$0xff]  ;;  %v1600_v54 = vpack.c.bf16 %v571_v48, %v570_v47 }
  0x53   :  { %1591 = vmatpush3.bf16.msra.mxu1 %v1590_v27  ;;  %v554_v55 = vld [vmem:[%s3424_s4 + $0x50] sm:$0xff]  ;;  %v555_v56 = vld [vmem:[%s3424_s4 + $0x58] sm:$0xff]  ;;  %v1480_v57 = vpack.c.bf16 %v145_v50, %v143_v49  ;;  %v572_v59 = vld [vmem:[%s3424_s4 + $0xe0] sm:$0xff] }
  0x54   :  { %1593 = vmatprep.subr.bf16.mxu1 %v1592_v30  ;;  %v144_v58 = vld [vmem:[%s3422_s2 + $0x310] sm:$0xff]  ;;  %v573_v60 = vld [vmem:[%s3424_s4 + $0xe8] sm:$0xff]  ;;  %v149_v62 = vld [vmem:[%s3422_s2 + $0x338] sm:$0xff]  ;;  %v1602_v63 = vpack.c.bf16 %v555_v56, %v554_v55 }
  0x55   :  { %1467 = vmatpush1.bf16.msra.mxu0 %v1466_v16  ;;  %v147_v61 = vld [vmem:[%s3422_s2 + $0x328] sm:$0xff]  ;;  %v1482_v0 = vpack.c.bf16 %v144_v58, %v142_v53  ;;  %v1604_v1 = vpack.c.bf16 %v573_v60, %v572_v59  ;;  %v146_v3 = vld [vmem:[%s3422_s2 + $0x320] sm:$0xff]  ;;  %v148_v4 = vld [vmem:[%s3422_s2 + $0x330] sm:$0xff] }
  0x56   :  { %1469 = vmatprep.subr.bf16.mxu0 %v1468_v21  ;;  %v1484_v2 = vpack.c.bf16 %v149_v62, %v147_v61  ;;  %v151_v5 = vld [vmem:[%s3422_s2 + $0x348] sm:$0xff]  ;;  %v153_v6 = vld [vmem:[%s3422_s2 + $0x358] sm:$0xff]  ;;  %v1486_v7 = vpack.c.bf16 %v148_v4, %v146_v3  ;;  %v150_v9 = vld [vmem:[%s3422_s2 + $0x340] sm:$0xff] }
  0x57   :  { %1595 = vmatpush3.bf16.msra.mxu1 %v1594_v39  ;;  %v1488_v8 = vpack.c.bf16 %v153_v6, %v151_v5  ;;  %v152_v10 = vld [vmem:[%s3422_s2 + $0x350] sm:$0xff]  ;;  %v155_v11 = vld [vmem:[%s3422_s2 + $0x368] sm:$0xff]  ;;  %v157_v12 = vld [vmem:[%s3422_s2 + $0x378] sm:$0xff] }
  0x58   :  { %1597 = vmatprep.subr.bf16.mxu1 %v1596_v42  ;;  %v1490_v13 = vpack.c.bf16 %v152_v10, %v150_v9  ;;  %v1492_v14 = vpack.c.bf16 %v157_v12, %v155_v11  ;;  %v154_v15 = vld [vmem:[%s3422_s2 + $0x360] sm:$0xff]  ;;  %v156_v16 = vld [vmem:[%s3422_s2 + $0x370] sm:$0xff]  ;;  %v159_v17 = vld [vmem:[%s3422_s2 + $0x388] sm:$0xff] }
  0x59   :  { %1471 = vmatpush1.bf16.msra.mxu0 %v1470_v28  ;;  %v161_v18 = vld [vmem:[%s3422_s2 + $0x398] sm:$0xff]  ;;  %v1494_v19 = vpack.c.bf16 %v156_v16, %v154_v15  ;;  %v158_v21 = vld [vmem:[%s3422_s2 + $0x380] sm:$0xff]  ;;  %v160_v22 = vld [vmem:[%s3422_s2 + $0x390] sm:$0xff] }
  0x5a   :  { %1473 = vmatprep.subr.bf16.mxu0 %v1472_v33  ;;  %v1496_v20 = vpack.c.bf16 %v161_v18, %v159_v17  ;;  %v163_v23 = vld [vmem:[%s3422_s2 + $0x3a8] sm:$0xff]  ;;  %v165_v24 = vld [vmem:[%s3422_s2 + $0x3b8] sm:$0xff]  ;;  %v1498_v25 = vpack.c.bf16 %v160_v22, %v158_v21  ;;  %v162_v27 = vld [vmem:[%s3422_s2 + $0x3a0] sm:$0xff] }
  0x5b   :  { %1599 = vmatpush3.bf16.msra.mxu1 %v1598_v51  ;;  %v1500_v26 = vpack.c.bf16 %v165_v24, %v163_v23  ;;  %v164_v28 = vld [vmem:[%s3422_s2 + $0x3b0] sm:$0xff]  ;;  %v167_v29 = vld [vmem:[%s3422_s2 + $0x3c8] sm:$0xff]  ;;  %v169_v30 = vld [vmem:[%s3422_s2 + $0x3d8] sm:$0xff] }
  0x5c   :  { %1601 = vmatprep.subr.bf16.mxu1 %v1600_v54  ;;  %v1502_v31 = vpack.c.bf16 %v164_v28, %v162_v27  ;;  %v1504_v32 = vpack.c.bf16 %v169_v30, %v167_v29  ;;  %v166_v33 = vld [vmem:[%s3422_s2 + $0x3c0] sm:$0xff]  ;;  %v168_v34 = vld [vmem:[%s3422_s2 + $0x3d0] sm:$0xff]  ;;  %v171_v35 = vld [vmem:[%s3422_s2 + $0x3e8] sm:$0xff] }
  0x5d   :  { %1475 = vmatpush1.bf16.msra.mxu0 %v1474_v40  ;;  %v173_v36 = vld [vmem:[%s3422_s2 + $0x3f8] sm:$0xff]  ;;  %v1506_v37 = vpack.c.bf16 %v168_v34, %v166_v33  ;;  %v170_v39 = vld [vmem:[%s3422_s2 + $0x3e0] sm:$0xff]  ;;  %v172_v40 = vld [vmem:[%s3422_s2 + $0x3f0] sm:$0xff] }
  0x5e   :  { %1477 = vmatprep.subr.bf16.mxu0 %v1476_v45  ;;  %v1508_v38 = vpack.c.bf16 %v173_v36, %v171_v35  ;;  %v175_v41 = vld [vmem:[%s3422_s2 + $0x408] sm:$0xff]  ;;  %v177_v42 = vld [vmem:[%s3422_s2 + $0x418] sm:$0xff]  ;;  %v1510_v43 = vpack.c.bf16 %v172_v40, %v170_v39  ;;  %v174_v45 = vld [vmem:[%s3422_s2 + $0x400] sm:$0xff] }
  0x5f   :  { %1603 = vmatpush3.bf16.msra.mxu1 %v1602_v63  ;;  %v1512_v44 = vpack.c.bf16 %v177_v42, %v175_v41  ;;  %v176_v46 = vld [vmem:[%s3422_s2 + $0x410] sm:$0xff]  ;;  %v179_v47 = vld [vmem:[%s3422_s2 + $0x428] sm:$0xff]  ;;  %v181_v48 = vld [vmem:[%s3422_s2 + $0x438] sm:$0xff] }
  0x60   :  { %1605 = vmatprep.subr.bf16.mxu1 %v1604_v1  ;;  %v41_v49 = vld [vmem:[%s3420_s0 + $0x10] sm:$0xff]  ;;  %v1514_v50 = vpack.c.bf16 %v176_v46, %v174_v45  ;;  %v1516_v51 = vpack.c.bf16 %v181_v48, %v179_v47  ;;  %v44_v54 = vld [vmem:[%s3420_s0 + $0x28] sm:$0xff]  ;;  %v185_v56 = vld [vmem:[%s3422_s2 + $0x458] sm:$0xff] }
  0x61   :  { %1479 = vmatpush1.bf16.msra.mxu0 %v1478_v52  ;;  %v178_v52 = vld [vmem:[%s3422_s2 + $0x420] sm:$0xff]  ;;  %v180_v53 = vld [vmem:[%s3422_s2 + $0x430] sm:$0xff]  ;;  %v183_v55 = vld [vmem:[%s3422_s2 + $0x448] sm:$0xff] }
  0x62   :  { %1481 = vmatprep.subr.bf16.mxu0 %v1480_v57  ;;  %v1518_v57 = vpack.c.bf16 %v180_v53, %v178_v52  ;;  %v1520_v58 = vpack.c.bf16 %v185_v56, %v183_v55  ;;  %v182_v59 = vld [vmem:[%s3422_s2 + $0x440] sm:$0xff]  ;;  %v184_v60 = vld [vmem:[%s3422_s2 + $0x450] sm:$0xff]  ;;  %v187_v61 = vld [vmem:[%s3422_s2 + $0x468] sm:$0xff] }
  0x63   :  { %v189_v62 = vld [vmem:[%s3422_s2 + $0x478] sm:$0xff]  ;;  %v1522_v63 = vpack.c.bf16 %v184_v60, %v182_v59  ;;  %v186_v1 = vld [vmem:[%s3422_s2 + $0x460] sm:$0xff]  ;;  %v191_v3 = vld [vmem:[%s3422_s2 + $0x488] sm:$0xff] }
  0x64   :  { %v193_v4 = vld [vmem:[%s3422_s2 + $0x498] sm:$0xff]  ;;  %v195_v9 = vld [vmem:[%s3422_s2 + $0x4a8] sm:$0xff]  ;;  %v222_v55 = vld [vmem:[%s3422_s2 + $0x580] sm:$0xff] }
  0x65   :  { %1483 = vmatpush1.bf16.msra.mxu0 %v1482_v0  ;;  %v1524_v0 = vpack.c.bf16 %v189_v62, %v187_v61  ;;  %v1528_v6 = vpack.c.bf16 %v193_v4, %v191_v3  ;;  %v197_v10 = vld [vmem:[%s3422_s2 + $0x4b8] sm:$0xff]  ;;  %v199_v15 = vld [vmem:[%s3422_s2 + $0x4c8] sm:$0xff]  ;;  %v224_v56 = vld [vmem:[%s3422_s2 + $0x590] sm:$0xff] }
  0x66   :  { %1485 = vmatprep.subr.bf16.mxu0 %v1484_v2  ;;  %v188_v2 = vld [vmem:[%s3422_s2 + $0x470] sm:$0xff]  ;;  %v1532_v12 = vpack.c.bf16 %v197_v10, %v195_v9  ;;  %v201_v16 = vld [vmem:[%s3422_s2 + $0x4d8] sm:$0xff]  ;;  %v203_v21 = vld [vmem:[%s3422_s2 + $0x4e8] sm:$0xff]  ;;  %v1562_v59 = vpack.c.bf16 %v224_v56, %v222_v55 }
  0x67   :  { %v1526_v5 = vpack.c.bf16 %v188_v2, %v186_v1  ;;  %v1536_v18 = vpack.c.bf16 %v201_v16, %v199_v15  ;;  %v205_v22 = vld [vmem:[%s3422_s2 + $0x4f8] sm:$0xff]  ;;  %v207_v27 = vld [vmem:[%s3422_s2 + $0x508] sm:$0xff]  ;;  %v226_v61 = vld [vmem:[%s3422_s2 + $0x5a0] sm:$0xff] }
  0x68   :  { %v1540_v24 = vpack.c.bf16 %v205_v22, %v203_v21  ;;  %v209_v28 = vld [vmem:[%s3422_s2 + $0x518] sm:$0xff]  ;;  %v211_v33 = vld [vmem:[%s3422_s2 + $0x528] sm:$0xff]  ;;  %v228_v62 = vld [vmem:[%s3422_s2 + $0x5b0] sm:$0xff] }
  0x69   :  { %1487 = vmatpush1.bf16.msra.mxu0 %v1486_v7  ;;  %v190_v7 = vld [vmem:[%s3422_s2 + $0x480] sm:$0xff]  ;;  %v1544_v30 = vpack.c.bf16 %v209_v28, %v207_v27  ;;  %v213_v34 = vld [vmem:[%s3422_s2 + $0x538] sm:$0xff]  ;;  %v215_v39 = vld [vmem:[%s3422_s2 + $0x548] sm:$0xff]  ;;  %v1566_v1 = vpack.c.bf16 %v228_v62, %v226_v61 }
  0x6a   :  { %1489 = vmatprep.subr.bf16.mxu0 %v1488_v8  ;;  %v192_v8 = vld [vmem:[%s3422_s2 + $0x490] sm:$0xff]  ;;  %v1548_v36 = vpack.c.bf16 %v213_v34, %v211_v33  ;;  %v217_v40 = vld [vmem:[%s3422_s2 + $0x558] sm:$0xff]  ;;  %v219_v45 = vld [vmem:[%s3422_s2 + $0x568] sm:$0xff] }
  0x6b   :  { %v1530_v11 = vpack.c.bf16 %v192_v8, %v190_v7  ;;  %v1552_v42 = vpack.c.bf16 %v217_v40, %v215_v39  ;;  %v221_v46 = vld [vmem:[%s3422_s2 + $0x578] sm:$0xff]  ;;  %v230_v3 = vld [vmem:[%s3422_s2 + $0x5c0] sm:$0xff]  ;;  %v232_v4 = vld [vmem:[%s3422_s2 + $0x5d0] sm:$0xff] }
  0x6c   :  { %v1556_v48 = vpack.c.bf16 %v221_v46, %v219_v45  ;;  %v225_v52 = vld [vmem:[%s3422_s2 + $0x598] sm:$0xff]  ;;  %v1570_v7 = vpack.c.bf16 %v232_v4, %v230_v3  ;;  %v234_v9 = vld [vmem:[%s3422_s2 + $0x5e0] sm:$0xff]  ;;  %v236_v10 = vld [vmem:[%s3422_s2 + $0x5f0] sm:$0xff] }
  0x6d   :  { %1491 = vmatpush1.bf16.msra.mxu0 %v1490_v13  ;;  %v194_v13 = vld [vmem:[%s3422_s2 + $0x4a0] sm:$0xff]  ;;  %v240_v16 = vld [vmem:[%s3422_s2 + $0x610] sm:$0xff]  ;;  %v557_v22 = vld [vmem:[%s3424_s4 + $0x68] sm:$0xff] }
  0x6e   :  { %1493 = vmatprep.subr.bf16.mxu0 %v1492_v14  ;;  %v196_v14 = vld [vmem:[%s3422_s2 + $0x4b0] sm:$0xff]  ;;  %v238_v15 = vld [vmem:[%s3422_s2 + $0x600] sm:$0xff]  ;;  %v559_v28 = vld [vmem:[%s3424_s4 + $0x78] sm:$0xff] }
  0x6f   :  { %v1534_v17 = vpack.c.bf16 %v196_v14, %v194_v13  ;;  %v1574_v13 = vpack.c.bf16 %v236_v10, %v234_v9  ;;  %v556_v21 = vld [vmem:[%s3424_s4 + $0x60] sm:$0xff]  ;;  %v558_v27 = vld [vmem:[%s3424_s4 + $0x70] sm:$0xff]  ;;  %v739_v56 = vld [vmem:[%s3428_s8 + $0x38] sm:$0xff] }
  0x70   :  { %v242_v33 = vld [vmem:[%s3423_s3] sm:$0x3]  ;;  %v746_v61 = vld [vmem:[%s3428_s8 + $0x70] sm:$0xff]  ;;  %v753_v62 = vld [vmem:[%s3428_s8 + $0xa8] sm:$0xff] }
  0x71   :  { %1495 = vmatpush1.bf16.msra.mxu0 %v1494_v19  ;;  %v198_v19 = vld [vmem:[%s3422_s2 + $0x4c0] sm:$0xff]  ;;  %v774_v10 = vld [vmem:[%s3428_s8 + $0x150] sm:$0xff] }
  0x72   :  { %1497 = vmatprep.subr.bf16.mxu0 %v1496_v20  ;;  %v200_v20 = vld [vmem:[%s3422_s2 + $0x4d0] sm:$0xff]  ;;  %v760_v4 = vld [vmem:[%s3428_s8 + $0xe0] sm:$0xff] }
  0x73   :  { %v1538_v23 = vpack.c.bf16 %v200_v20, %v198_v19  ;;  %v1878_v19 = vmov 0.0   ;;  %v45_v20 = vld [vmem:[%s3420_s0 + $0x30] sm:$0xff] }
  0x75   :  { %1499 = vmatpush1.bf16.msra.mxu0 %v1498_v25  ;;  %v202_v25 = vld [vmem:[%s3422_s2 + $0x4e0] sm:$0xff] }
  0x76   :  { %1501 = vmatprep.subr.bf16.mxu0 %v1500_v26  ;;  %v204_v26 = vld [vmem:[%s3422_s2 + $0x4f0] sm:$0xff] }
  0x77   :  { %v1542_v29 = vpack.c.bf16 %v204_v26, %v202_v25  ;;  %v575_v25 = vld [vmem:[%s3424_s4 + $0xf8] sm:$0xff] }
  0x79   :  { %1503 = vmatpush1.bf16.msra.mxu0 %v1502_v31  ;;  %v206_v31 = vld [vmem:[%s3422_s2 + $0x500] sm:$0xff] }
  0x7a   :  { %1505 = vmatprep.subr.bf16.mxu0 %v1504_v32  ;;  %v208_v32 = vld [vmem:[%s3422_s2 + $0x510] sm:$0xff] }
  0x7b   :  { %v1546_v35 = vpack.c.bf16 %v208_v32, %v206_v31 }
  0x7d   :  { %1507 = vmatpush1.bf16.msra.mxu0 %v1506_v37  ;;  %v210_v37 = vld [vmem:[%s3422_s2 + $0x520] sm:$0xff] }
  0x7e   :  { %1509 = vmatprep.subr.bf16.mxu0 %v1508_v38  ;;  %v212_v38 = vld [vmem:[%s3422_s2 + $0x530] sm:$0xff] }
  0x7f   :  { %v1550_v41 = vpack.c.bf16 %v212_v38, %v210_v37 }
  0x81   :  { %1511 = vmatpush1.bf16.msra.mxu0 %v1510_v43  ;;  %v214_v43 = vld [vmem:[%s3422_s2 + $0x540] sm:$0xff] }
  0x82   :  { %1513 = vmatprep.subr.bf16.mxu0 %v1512_v44  ;;  %v216_v44 = vld [vmem:[%s3422_s2 + $0x550] sm:$0xff] }
  0x83   :  { %v1554_v47 = vpack.c.bf16 %v216_v44, %v214_v43  ;;  %v1313_v44 = vld [vmem:[%s3425_s5] ss:$0 sm:$0xff] }
  0x84   :  { %394 = vmatmul.mubr.f32.vlgmr.msra.gmra.mrb[0].mxu0 %v41_v49  ;;  %v218_v49 = vld [vmem:[%s3422_s2 + $0x560] sm:$0xff] }
  0x85   :  { %1515 = vmatpush1.bf16.msra.mxu0 %v1514_v50  ;;  %464 = vmatprep.mubr.f32.mxu0 %v44_v54  ;;  %v220_v50 = vld [vmem:[%s3422_s2 + $0x570] sm:$0xff] }
  0x86   :  { %1517 = vmatprep.subr.bf16.mxu0 %v1516_v51  ;;  %v223_v51 = vld [vmem:[%s3422_s2 + $0x588] sm:$0xff]  ;;  %v1558_v53 = vpack.c.bf16 %v220_v50, %v218_v49  ;;  %v1879_v50 = vmov 1  }
  0x87   :  { %v1560_v54 = vpack.c.bf16 %v225_v52, %v223_v51  ;;  %1850 = vset.pattern.permute.xlu1 %v1879_v50  ;;  %v1880_v51 = vmov 0   ;;  %v733_v52 = vld [vmem:[%s3428_s8 + $0x8] sm:$0xff] }
  0x88   :  { %1849 = vset.pattern.permute.xlu0 %v1880_v51  ;;  %v892_v51 = vld [vmem:[%s3428_s8 + $0x500] sm:$0xff] }
  0x89   :  { %1519 = vmatpush1.bf16.msra.mxu0 %v1518_v57  ;;  %v227_v57 = vld [vmem:[%s3422_s2 + $0x5a8] sm:$0xff] }
  0x8a   :  { %1521 = vmatprep.subr.bf16.mxu0 %v1520_v58  ;;  %v229_v58 = vld [vmem:[%s3422_s2 + $0x5b8] sm:$0xff] }
  0x8b   :  { %v1564_v60 = vpack.c.bf16 %v229_v58, %v227_v57  ;;  %v747_v57 = vld [vmem:[%s3428_s8 + $0x78] sm:$0xff]  ;;  %v754_v58 = vld [vmem:[%s3428_s8 + $0xb0] sm:$0xff] }
  0x8d   :  { %1523 = vmatpush1.bf16.msra.mxu0 %v1522_v63  ;;  %v231_v63 = vld [vmem:[%s3422_s2 + $0x5c8] sm:$0xff] }
  0x8e   :  { %1525 = vmatprep.subr.bf16.mxu0 %v1524_v0  ;;  %v233_v0 = vld [vmem:[%s3422_s2 + $0x5d8] sm:$0xff] }
  0x8f   :  { %v1568_v2 = vpack.c.bf16 %v233_v0, %v231_v63  ;;  %v761_v63 = vld [vmem:[%s3428_s8 + $0xe8] sm:$0xff]  ;;  %v768_v0 = vld [vmem:[%s3428_s8 + $0x120] sm:$0xff] }
  0x90   :  { %v1620_v3 = vpack.c.bf16 %v768_v0, %v761_v63  ;;  %v830_v63 = vld [vmem:[%s3428_s8 + $0x310] sm:$0xff]  ;;  %v837_v0 = vld [vmem:[%s3428_s8 + $0x348] sm:$0xff] }
  0x91   :  { %1527 = vmatpush1.bf16.msra.mxu0 %v1526_v5  ;;  %v235_v5 = vld [vmem:[%s3422_s2 + $0x5e8] sm:$0xff] }
  0x92   :  { %1529 = vmatprep.subr.bf16.mxu0 %v1528_v6  ;;  %v237_v6 = vld [vmem:[%s3422_s2 + $0x5f8] sm:$0xff] }
  0x93   :  { %v1572_v8 = vpack.c.bf16 %v237_v6, %v235_v5  ;;  %v767_v5 = vld [vmem:[%s3428_s8 + $0x118] sm:$0xff] }
  0x94   :  { %v775_v6 = vld [vmem:[%s3428_s8 + $0x158] sm:$0xff] }
  0x95   :  { %1531 = vmatpush1.bf16.msra.mxu0 %v1530_v11  ;;  %v239_v11 = vld [vmem:[%s3422_s2 + $0x608] sm:$0xff] }
  0x96   :  { %1533 = vmatprep.subr.bf16.mxu0 %v1532_v12  ;;  %v241_v12 = vld [vmem:[%s3422_s2 + $0x618] sm:$0xff] }
  0x97   :  { %v1576_v14 = vpack.c.bf16 %v241_v12, %v239_v11  ;;  %v781_v11 = vld [vmem:[%s3428_s8 + $0x188] sm:$0xff] }
  0x98   :  { %v789_v12 = vld [vmem:[%s3428_s8 + $0x1c8] sm:$0xff] }
  0x99   :  { %1535 = vmatpush1.bf16.msra.mxu0 %v1534_v17  ;;  %v43_v17 = vld [vmem:[%s3420_s0 + $0x20] sm:$0xff] }
  0x9a   :  { %1537 = vmatprep.subr.bf16.mxu0 %v1536_v18  ;;  %v1578_v18 = vpack.c.bf16 %v240_v16, %v238_v15  ;;  %v850_v15 = vld [vmem:[%s3428_s8 + $0x3b0] sm:$0xff]  ;;  %v857_v16 = vld [vmem:[%s3428_s8 + $0x3e8] sm:$0xff] }
  0x9d   :  { %1539 = vmatpush1.bf16.msra.mxu0 %v1538_v23  ;;  %v1606_v23 = vpack.c.bf16 %v557_v22, %v556_v21  ;;  %v1804_v21 = vpack.c.bf16 %v857_v16, %v850_v15  ;;  %v745_v22 = vld [vmem:[%s3428_s8 + $0x68] sm:$0xff]  ;;  %v808_v16 = vld [vmem:[%s3428_s8 + $0x260] sm:$0xff] }
  0x9e   :  { %1541 = vmatprep.subr.bf16.mxu0 %v1540_v24  ;;  %v574_v24 = vld [vmem:[%s3424_s4 + $0xf0] sm:$0xff]  ;;  %s1881_s4 = smov 126  }
  0x9f   :  { %1607 = vmatpush3.bf16.msra.mxu1 %v1606_v23  ;;  %v1608_v26 = vpack.c.bf16 %v575_v25, %v574_v24  ;;  %v803_v23 = vld [vmem:[%s3428_s8 + $0x238] sm:$0xff]  ;;  %v810_v24 = vld [vmem:[%s3428_s8 + $0x270] sm:$0xff] }
  0xa1   :  { %1543 = vmatpush1.bf16.msra.mxu0 %v1542_v29  ;;  %v1610_v29 = vpack.c.bf16 %v559_v28, %v558_v27  ;;  %1609 = vmatprep.subr.bf16.mxu1 %v1608_v26  ;;  %v864_v26 = vld [vmem:[%s3428_s8 + $0x420] sm:$0xff]  ;;  %v871_v27 = vld [vmem:[%s3428_s8 + $0x458] sm:$0xff] }
  0xa2   :  { %1545 = vmatprep.subr.bf16.mxu0 %v1544_v30  ;;  %v244_v30 = vlaneseq  ;;  %v752_v28 = vld [vmem:[%s3428_s8 + $0xa0] sm:$0xff] }
  0xa3   :  { %1611 = vmatpush3.bf16.msra.mxu1 %v1610_v29  ;;  %v759_v29 = vld [vmem:[%s3428_s8 + $0xd8] sm:$0xff] }
  0xa4   :  { %v2654_v31 = vshrl.u32 %v244_v30, 7 }
  0xa5   :  { %1547 = vmatpush1.bf16.msra.mxu0 %v1546_v35 }
  0xa6   :  { %1549 = vmatprep.subr.bf16.mxu0 %v1548_v36  ;;  %v2657_v32 = vsub.s32 0, %v2654_v31  ;;  %v2663_v34 = vsub.s32 1, %v2654_v31 }
  0xa8   :  { %v247_v35 = vrot.slane %v242_v33, %v2657_v32  ;;  %v251_v36 = vrot.slane %v242_v33, %v2663_v34  ;;  %v802_v33 = vld [vmem:[%s3428_s8 + $0x230] sm:$0xff] }
  0xa9   :  { %1551 = vmatpush1.bf16.msra.mxu0 %v1550_v41 }
  0xaa   :  { %1553 = vmatprep.subr.bf16.mxu0 %v1552_v42 }
  0xad   :  { %1555 = vmatpush1.bf16.msra.mxu0 %v1554_v47 }
  0xae   :  { %1557 = vmatprep.subr.bf16.mxu0 %v1556_v48 }
  0xb1   :  { %1559 = vmatpush1.bf16.msra.mxu0 %v1558_v53  ;;  %v740_v53 = vld [vmem:[%s3428_s8 + $0x40] sm:$0xff] }
  0xb2   :  { %1561 = vmatprep.subr.bf16.mxu0 %v1560_v54  ;;  %v732_v54 = vld [vmem:[%s3428_s8] sm:$0xff]  ;;  %v1612_v55 = vpack.c.bf16 %v740_v53, %v733_v52  ;;  %v899_v52 = vld [vmem:[%s3428_s8 + $0x538] sm:$0xff] }
  0xb4   :  { %1613 = vmatprep.subr.bf16.mxu1 %v1612_v55  ;;  %v1816_v55 = vpack.c.bf16 %v899_v52, %v892_v51  ;;  %v914_v52 = vld [vmem:[%s3428_s8 + $0x5b0] sm:$0xff] }
  0xb5   :  { %1563 = vmatpush1.bf16.msra.mxu0 %v1562_v59  ;;  %v1614_v59 = vpack.c.bf16 %v739_v56, %v732_v54  ;;  %v823_v54 = vld [vmem:[%s3428_s8 + $0x2d8] sm:$0xff]  ;;  %v780_v56 = vld [vmem:[%s3428_s8 + $0x180] sm:$0xff] }
  0xb6   :  { %1565 = vmatprep.subr.bf16.mxu0 %v1564_v60  ;;  %v1616_v60 = vpack.c.bf16 %v754_v58, %v747_v57  ;;  %v787_v57 = vld [vmem:[%s3428_s8 + $0x1b8] sm:$0xff] }
  0xb7   :  { %v831_v58 = vld [vmem:[%s3428_s8 + $0x318] sm:$0xff] }
  0xb9   :  { %1567 = vmatpush1.bf16.msra.mxu0 %v1566_v1 }
  0xba   :  { %1569 = vmatprep.subr.bf16.mxu0 %v1568_v2  ;;  %v1618_v2 = vpack.c.bf16 %v753_v62, %v746_v61  ;;  %v913_v61 = vld [vmem:[%s3428_s8 + $0x5a8] sm:$0xff] }
  0xbd   :  { %1571 = vmatpush1.bf16.msra.mxu0 %v1570_v7  ;;  %v782_v7 = vld [vmem:[%s3428_s8 + $0x190] sm:$0xff] }
  0xbe   :  { %1573 = vmatprep.subr.bf16.mxu0 %v1572_v8  ;;  %v1622_v8 = vpack.c.bf16 %v767_v5, %v760_v4  ;;  %v1624_v9 = vpack.c.bf16 %v782_v7, %v775_v6  ;;  %v794_v5 = vld [vmem:[%s3428_s8 + $0x1f0] sm:$0xff]  ;;  %v801_v6 = vld [vmem:[%s3428_s8 + $0x228] sm:$0xff]  ;;  %v852_v7 = vld [vmem:[%s3428_s8 + $0x3c0] sm:$0xff] }
  0xc1   :  { %1575 = vmatpush1.bf16.msra.mxu0 %v1574_v13  ;;  %v796_v13 = vld [vmem:[%s3428_s8 + $0x200] sm:$0xff] }
  0xc2   :  { %1577 = vmatprep.subr.bf16.mxu0 %v1576_v14  ;;  %v1626_v14 = vpack.c.bf16 %v781_v11, %v774_v10  ;;  %v1642_v10 = vpack.c.bf16 %v837_v0, %v830_v63  ;;  %v844_v11 = vld [vmem:[%s3428_s8 + $0x380] sm:$0xff]  ;;  %v935_v63 = vld [vmem:[%s3428_s8 + $0x658] sm:$0xff]  ;;  %v934_v0 = vld [vmem:[%s3428_s8 + $0x650] sm:$0xff] }
  0xc4   :  { %465 = vmatmul.mubr.f32.vlgmr.msra.gmra.mrb[0].mxu0 %v43_v17  ;;  %v738_v17 = vld [vmem:[%s3428_s8 + $0x30] sm:$0xff] }
  0xc5   :  { %1579 = vmatpush1.bf16.msra.mxu0 %v1578_v18  ;;  %535 = vmatprep.mubr.f32.mxu0 %v1878_v19  ;;  %v1628_v18 = vpack.c.bf16 %v796_v13, %v789_v12  ;;  %v788_v19 = vld [vmem:[%s3428_s8 + $0x1c0] sm:$0xff]  ;;  %v1806_v25 = vpack.c.bf16 %v745_v22, %v738_v17  ;;  %v1822_v12 = vpack.c.bf16 %v801_v6, %v794_v5  ;;  %v815_v17 = vld [vmem:[%s3428_s8 + $0x298] sm:$0xff] }
  0xc6   :  { %1805 = vmatprep.subr.bf16.mxu0 %v1804_v21  ;;  %v1826_v21 = vpack.c.bf16 %v815_v17, %v808_v16  ;;  %v843_v16 = vld [vmem:[%s3428_s8 + $0x378] sm:$0xff] }
  0xcc   :  { %1312 = vmatmul.mubr.msk.f32.vlgmr.msra.gmra.mrb[0].mxu0 %vm254_vm0, %v45_v20  ;;  %v795_v20 = vld [vmem:[%s3428_s8 + $0x1f8] sm:$0xff] }
  0xcd   :  { %v1630_v30 = vpack.c.bf16 %v795_v20, %v788_v19  ;;  %1807 = vmatpush3.bf16.msra.mxu0 %v1806_v25  ;;  %v866_v19 = vld [vmem:[%s3428_s8 + $0x430] sm:$0xff]  ;;  %v873_v25 = vld [vmem:[%s3428_s8 + $0x468] sm:$0xff] }
 0x19f   :  { %v537_v37 = vpop.f32.mrb[0].mxu0 }
 0x1a0   :  { %v1836_v38 = vadd.f32 %v537_v37, %v247_v35  ;;  %v539_v39 = vpop.f32.mrb[1].mxu0  ;;  %v809_v35 = vld [vmem:[%s3428_s8 + $0x268] sm:$0xff]  ;;  %v1810_v37 = vpack.c.bf16 %v759_v29, %v752_v28  ;;  %v872_v29 = vld [vmem:[%s3428_s8 + $0x460] sm:$0xff] }
 0x1a1   :  { %v1837_v40 = vadd.f32 %v539_v39, %v251_v36  ;;  %v1808_v36 = vpack.c.bf16 %v871_v27, %v864_v26  ;;  %v817_v39 = vld [vmem:[%s3428_s8 + $0x2a8] sm:$0xff]  ;;  %v880_v26 = vld [vmem:[%s3428_s8 + $0x4a0] sm:$0xff] }
 0x1a2   :  { %v542_v42 = vmax.f32 %v1836_v38, 0.0  ;;  %v1632_v38 = vpack.c.bf16 %v810_v24, %v803_v23  ;;  %v858_v23 = vld [vmem:[%s3428_s8 + $0x3f0] sm:$0xff]  ;;  %v865_v24 = vld [vmem:[%s3428_s8 + $0x428] sm:$0xff]  ;;  %v1652_v28 = vpack.c.bf16 %v880_v26, %v873_v25 }
 0x1a3   :  { %v543_v41 = vmax.f32 %v1837_v40, 0.0  ;;  %v878_v40 = vld [vmem:[%s3428_s8 + $0x490] sm:$0xff]  ;;  %1809 = vmatprep.subr.bf16.mxu0 %v1808_v36  ;;  %v1650_v27 = vpack.c.bf16 %v865_v24, %v858_v23  ;;  %v663_v23 = vld [vmem:[%s3426_s6] sm:$0xf] }
 0x1a4   :  { %1811 = vmatpush3.bf16.msra.mxu0 %v1810_v37  ;;  %v697_v24 = vrot.slane %v663_v23, %v2663_v34 }
 0x1a5   :  { %647 = vmatprep.mubr.f32.mxu1 %v543_v41  ;;  %v885_v41 = vld [vmem:[%s3428_s8 + $0x4c8] sm:$0xff] }
 0x1a6   :  { %648 = vmatmul.mubr.f32.vlgmr.msra.gmra.mrb[0].mxu1 %v542_v42  ;;  %v824_v42 = vld [vmem:[%s3428_s8 + $0x2e0] sm:$0xff] }
 0x1a7   :  { %1615 = vmatpush1.bf16.msra.mxu1 %v1614_v59  ;;  %v1636_v53 = vpack.c.bf16 %v824_v42, %v817_v39  ;;  %v838_v59 = vld [vmem:[%s3428_s8 + $0x350] sm:$0xff]  ;;  %v893_v39 = vld [vmem:[%s3428_s8 + $0x508] sm:$0xff] }
 0x1a8   :  { %1617 = vmatprep.subr.bf16.mxu1 %v1616_v60  ;;  %v906_v60 = vld [vmem:[%s3428_s8 + $0x570] sm:$0xff] }
 0x1a9   :  { %v1820_v4 = vpack.c.bf16 %v913_v61, %v906_v60 }
 0x1ab   :  { %1619 = vmatpush1.bf16.msra.mxu1 %v1618_v2  ;;  %v1640_v2 = vpack.c.bf16 %v838_v59, %v831_v58  ;;  %v929_v58 = vld [vmem:[%s3428_s8 + $0x628] sm:$0xff]  ;;  %v936_v59 = vld [vmem:[%s3428_s8 + $0x660] sm:$0xff] }
 0x1ac   :  { %1621 = vmatprep.subr.bf16.mxu1 %v1620_v3  ;;  %v845_v3 = vld [vmem:[%s3428_s8 + $0x388] sm:$0xff]  ;;  %v1668_v61 = vpack.c.bf16 %v936_v59, %v929_v58  ;;  %v748_v58 = vld [vmem:[%s3428_s8 + $0x80] sm:$0xff]  ;;  %v755_v59 = vld [vmem:[%s3428_s8 + $0xb8] sm:$0xff] }
 0x1ad   :  { %v1644_v13 = vpack.c.bf16 %v852_v7, %v845_v3  ;;  %v822_v3 = vld [vmem:[%s3428_s8 + $0x2d0] sm:$0xff]  ;;  %v943_v7 = vld [vmem:[%s3428_s8 + $0x698] sm:$0xff] }
 0x1af   :  { %1623 = vmatpush1.bf16.msra.mxu1 %v1622_v8  ;;  %v920_v8 = vld [vmem:[%s3428_s8 + $0x5e0] sm:$0xff] }
 0x1b0   :  { %1625 = vmatprep.subr.bf16.mxu1 %v1624_v9  ;;  %v927_v9 = vld [vmem:[%s3428_s8 + $0x618] sm:$0xff] }
 0x1b1   :  { %v1824_v15 = vpack.c.bf16 %v927_v9, %v920_v8  ;;  %v950_v8 = vld [vmem:[%s3428_s8 + $0x6d0] sm:$0xff] }
 0x1b2   :  { %v1672_v9 = vpack.c.bf16 %v950_v8, %v943_v7  ;;  %v783_v7 = vld [vmem:[%s3428_s8 + $0x198] sm:$0xff] }
 0x1b3   :  { %1627 = vmatpush1.bf16.msra.mxu1 %v1626_v14  ;;  %v851_v14 = vld [vmem:[%s3428_s8 + $0x3b8] sm:$0xff] }
 0x1b4   :  { %1629 = vmatprep.subr.bf16.mxu1 %v1628_v18  ;;  %v859_v18 = vld [vmem:[%s3428_s8 + $0x3f8] sm:$0xff]  ;;  %v1646_v20 = vpack.c.bf16 %v851_v14, %v844_v11  ;;  %v949_v11 = vld [vmem:[%s3428_s8 + $0x6c8] sm:$0xff] }
 0x1b5   :  { %v1648_v22 = vpack.c.bf16 %v866_v19, %v859_v18  ;;  %v955_v14 = vld [vmem:[%s3428_s8 + $0x6f8] sm:$0xff] }
 0x1b6   :  { %v735_v19 = vld [vmem:[%s3428_s8 + $0x18] sm:$0xff] }
 0x1b7   :  { %1631 = vmatpush1.bf16.msra.mxu1 %v1630_v30  ;;  %v879_v30 = vld [vmem:[%s3428_s8 + $0x498] sm:$0xff] }
 0x1b8   :  { %1633 = vmatprep.subr.bf16.mxu1 %v1632_v38  ;;  %v1654_v36 = vpack.c.bf16 %v879_v30, %v872_v29  ;;  %v886_v38 = vld [vmem:[%s3428_s8 + $0x4d0] sm:$0xff]  ;;  %v791_v8 = vld [vmem:[%s3428_s8 + $0x1d8] sm:$0xff] }
 0x1b9   :  { %v1658_v42 = vpack.c.bf16 %v893_v39, %v886_v38 }
 0x279   :  { %v1346_v43 = vpop.f32.mrb[0].mxu1 }
 0x27a   :  { %v1347_v45 = vpop.f32.mrb[1].mxu1 }
 0x27b   :  { %v1348_v46 = vadd.f32 %v1347_v45, %v1346_v43  ;;  %v1812_v43 = vpack.c.bf16 %v885_v41, %v878_v40  ;;  %v773_v45 = vld [vmem:[%s3428_s8 + $0x148] sm:$0xff]  ;;  %v908_v41 = vld [vmem:[%s3428_s8 + $0x580] sm:$0xff] }
 0x27c   :  { %v901_v40 = vld [vmem:[%s3428_s8 + $0x548] sm:$0xff] }
 0x27d   :  { %v2670_v47 = vadd.f32 %v1348_v46, %v1313_v44  ;;  %v766_v44 = vld [vmem:[%s3428_s8 + $0x110] sm:$0xff]  ;;  %v1634_v46 = vpack.c.bf16 %v809_v35, %v802_v33  ;;  %1813 = vmatprep.subr.bf16.mxu0 %v1812_v43  ;;  %v887_v33 = vld [vmem:[%s3428_s8 + $0x4d8] sm:$0xff]  ;;  %v1660_v43 = vpack.c.bf16 %v908_v41, %v901_v40 }
 0x27e   :  { %v894_v35 = vld [vmem:[%s3428_s8 + $0x510] sm:$0xff] }
 0x27f   :  { %v653_v48 = vmul.f32 0.5, %v2670_v47  ;;  %1284 = vst.msk [vmem:[%s3431_s11] sm:$0xff] %vm1283_vm1, %v2670_v47  ;;  %1635 = vmatpush1.bf16.msra.mxu1 %v1634_v46  ;;  %v1656_v37 = vpack.c.bf16 %v894_v35, %v887_v33  ;;  %v915_v46 = vld [vmem:[%s3428_s8 + $0x5b8] sm:$0xff]  ;;  %v716_v33 = vld [vmem:[%s3427_s7] sm:$0x3] }
 0x280   :  { %1637 = vmatprep.subr.bf16.mxu1 %v1636_v53  ;;  %v921_v53 = vld [vmem:[%s3428_s8 + $0x5e8] sm:$0xff] }
 0x281   :  { %v654_v49 = vmul.f32 1.442695, %v653_v48  ;;  %v816_v48 = vld [vmem:[%s3428_s8 + $0x2a0] sm:$0xff] }
 0x282   :  { %v1638_v62 = vpack.c.bf16 %v823_v54, %v816_v48  ;;  %v922_v48 = vld [vmem:[%s3428_s8 + $0x5f0] sm:$0xff]  ;;  %v1666_v54 = vpack.c.bf16 %v921_v53, %v914_v52  ;;  %v749_v52 = vld [vmem:[%s3428_s8 + $0x88] sm:$0xff]  ;;  %v756_v53 = vld [vmem:[%s3428_s8 + $0xc0] sm:$0xff] }
 0x283   :  { %1852 = vpow2.f32 %v654_v49  ;;  %v1814_v49 = vpack.c.bf16 %v773_v45, %v766_v44  ;;  %v900_v44 = vld [vmem:[%s3428_s8 + $0x540] sm:$0xff]  ;;  %v907_v45 = vld [vmem:[%s3428_s8 + $0x578] sm:$0xff]  ;;  %v1664_v51 = vpack.c.bf16 %v922_v48, %v915_v46  ;;  %v734_v46 = vld [vmem:[%s3428_s8 + $0x10] sm:$0xff] }
 0x284   :  { %1639 = vmatpush1.bf16.msra.mxu1 %v1638_v62  ;;  %v928_v62 = vld [vmem:[%s3428_s8 + $0x620] sm:$0xff]  ;;  %v741_v48 = vld [vmem:[%s3428_s8 + $0x48] sm:$0xff] }
 0x285   :  { %1815 = vmatpush3.bf16.msra.mxu0 %v1814_v49  ;;  %1641 = vmatprep.subr.bf16.mxu1 %v1640_v2  ;;  %v1662_v49 = vpack.c.bf16 %v907_v45, %v900_v44  ;;  %v941_v2 = vld [vmem:[%s3428_s8 + $0x688] sm:$0xff] }
 0x286   :  { %1817 = vmatprep.subr.bf16.mxu0 %v1816_v55  ;;  %v656_v55 = vld [vmem:[%s3421_s1] sm:$0xff]  ;;  %v1828_v5 = vpack.c.bf16 %v941_v2, %v934_v0  ;;  %v762_v0 = vld [vmem:[%s3428_s8 + $0xf0] sm:$0xff]  ;;  %v777_v2 = vld [vmem:[%s3428_s8 + $0x168] sm:$0xff] }
 0x288   :  { %1643 = vmatpush1.bf16.msra.mxu1 %v1642_v10  ;;  %v942_v10 = vld [vmem:[%s3428_s8 + $0x690] sm:$0xff] }
 0x289   :  { %1645 = vmatprep.subr.bf16.mxu1 %v1644_v13  ;;  %v1674_v13 = vpack.c.bf16 %v949_v11, %v942_v10 }
 0x28c   :  { %1647 = vmatpush1.bf16.msra.mxu1 %v1646_v20  ;;  %v742_v20 = vld [vmem:[%s3428_s8 + $0x50] sm:$0xff] }
 0x28d   :  { %v1853_v1 = vpop.eup %1852  ;;  %1649 = vmatprep.subr.bf16.mxu1 %v1648_v22  ;;  %v676_v22 = vsub.s32 2, %v2654_v31 }
 0x28e   :  { %658 = vrot.lane.b32.xlu0 %v1853_v1, %s1881_s4  ;;  %v1818_v1 = vpack.c.bf16 %v787_v57, %v780_v56 }
 0x28f   :  { %v677_v26 = vrot.slane %v663_v23, %v676_v22 }
 0x290   :  { %1819 = vmatpush3.bf16.msra.mxu0 %v1818_v1  ;;  %1651 = vmatpush1.bf16.msra.mxu1 %v1650_v27  ;;  %v1670_v1 = vpack.c.bf16 %v935_v63, %v928_v62  ;;  %v707_v27 = vrot.slane %v697_v24, %v2663_v34  ;;  %v1682_v62 = vpack.c.bf16 %v755_v59, %v748_v58  ;;  %v896_v58 = vld [vmem:[%s3428_s8 + $0x520] sm:$0xff] }
 0x291   :  { %1821 = vmatprep.subr.bf16.mxu0 %v1820_v4  ;;  %1653 = vmatprep.subr.bf16.mxu1 %v1652_v28  ;;  %v829_v4 = vld [vmem:[%s3428_s8 + $0x308] sm:$0xff]  ;;  %v687_v30 = vrot.slane %v677_v26, %v2657_v32 }
 0x292   :  { %v1830_v6 = vpack.c.bf16 %v829_v4, %v822_v3  ;;  %v784_v3 = vld [vmem:[%s3428_s8 + $0x1a0] sm:$0xff]  ;;  %v833_v26 = vld [vmem:[%s3428_s8 + $0x328] sm:$0xff] }
 0x294   :  { %1823 = vmatpush3.bf16.msra.mxu0 %v1822_v12  ;;  %1655 = vmatpush1.bf16.msra.mxu1 %v1654_v36  ;;  %v948_v12 = vld [vmem:[%s3428_s8 + $0x6c0] sm:$0xff]  ;;  %v721_v36 = vrot.slane %v716_v33, %v2657_v32 }
 0x295   :  { %1825 = vmatprep.subr.bf16.mxu0 %v1824_v15  ;;  %1657 = vmatprep.subr.bf16.mxu1 %v1656_v37  ;;  %v836_v15 = vld [vmem:[%s3428_s8 + $0x340] sm:$0xff]  ;;  %v1832_v17 = vpack.c.bf16 %v955_v14, %v948_v12  ;;  %v725_v37 = vrot.slane %v716_v33, %v2663_v34  ;;  %v790_v12 = vld [vmem:[%s3428_s8 + $0x1d0] sm:$0xff]  ;;  %v805_v14 = vld [vmem:[%s3428_s8 + $0x248] sm:$0xff] }
 0x296   :  { %v1834_v18 = vpack.c.bf16 %v843_v16, %v836_v15  ;;  %v812_v15 = vld [vmem:[%s3428_s8 + $0x280] sm:$0xff]  ;;  %v839_v33 = vld [vmem:[%s3428_s8 + $0x358] sm:$0xff] }
 0x298   :  { %1827 = vmatpush3.bf16.msra.mxu0 %v1826_v21  ;;  %1659 = vmatpush1.bf16.msra.mxu1 %v1658_v42  ;;  %v1676_v21 = vpack.c.bf16 %v742_v20, %v735_v19  ;;  %v811_v19 = vld [vmem:[%s3428_s8 + $0x278] sm:$0xff] }
 0x299   :  { %1661 = vmatprep.subr.bf16.mxu1 %v1660_v43  ;;  %1829 = vmatprep.subr.bf16.mxu0 %v1828_v5  ;;  %v1688_v5 = vpack.c.bf16 %v784_v3, %v777_v2  ;;  %v819_v20 = vld [vmem:[%s3428_s8 + $0x2b8] sm:$0xff]  ;;  %v902_v3 = vld [vmem:[%s3428_s8 + $0x550] sm:$0xff] }
 0x29c   :  { %1663 = vmatpush1.bf16.msra.mxu1 %v1662_v49  ;;  %1831 = vmatpush3.bf16.msra.mxu0 %v1830_v6  ;;  %v776_v6 = vld [vmem:[%s3428_s8 + $0x160] sm:$0xff] }
 0x29d   :  { %1665 = vmatprep.subr.bf16.mxu1 %v1664_v51  ;;  %1833 = vmatprep.subr.bf16.mxu0 %v1832_v17  ;;  %v1690_v10 = vpack.c.bf16 %v783_v7, %v776_v6  ;;  %v1696_v17 = vpack.c.bf16 %v812_v15, %v805_v14  ;;  %v924_v6 = vld [vmem:[%s3428_s8 + $0x600] sm:$0xff]  ;;  %v930_v15 = vld [vmem:[%s3428_s8 + $0x630] sm:$0xff] }
 0x2a0   :  { %1667 = vmatpush1.bf16.msra.mxu1 %v1666_v54  ;;  %1835 = vmatpush3.bf16.msra.mxu0 %v1834_v18  ;;  %v804_v18 = vld [vmem:[%s3428_s8 + $0x240] sm:$0xff] }
 0x2a1   :  { %1669 = vmatprep.subr.bf16.mxu1 %v1668_v61  ;;  %v770_v61 = vld [vmem:[%s3428_s8 + $0x130] sm:$0xff] }
 0x2a4   :  { %1671 = vmatpush1.bf16.msra.mxu1 %v1670_v1  ;;  %v769_v1 = vld [vmem:[%s3428_s8 + $0x128] sm:$0xff] }
 0x2a5   :  { %1673 = vmatprep.subr.bf16.mxu1 %v1672_v9  ;;  %v1686_v4 = vpack.c.bf16 %v769_v1, %v762_v0  ;;  %v798_v9 = vld [vmem:[%s3428_s8 + $0x210] sm:$0xff] }
 0x2a6   :  { %v1692_v11 = vpack.c.bf16 %v798_v9, %v791_v8  ;;  %v910_v0 = vld [vmem:[%s3428_s8 + $0x590] sm:$0xff]  ;;  %v916_v9 = vld [vmem:[%s3428_s8 + $0x5c0] sm:$0xff] }
 0x2a8   :  { %1675 = vmatpush1.bf16.msra.mxu1 %v1674_v13  ;;  %v797_v13 = vld [vmem:[%s3428_s8 + $0x208] sm:$0xff] }
 0x2a9   :  { %1677 = vmatprep.subr.bf16.mxu1 %v1676_v21  ;;  %v1694_v16 = vpack.c.bf16 %v797_v13, %v790_v12  ;;  %v826_v21 = vld [vmem:[%s3428_s8 + $0x2f0] sm:$0xff] }
 0x2aa   :  { %v1700_v24 = vpack.c.bf16 %v826_v21, %v819_v20  ;;  %v938_v12 = vld [vmem:[%s3428_s8 + $0x670] sm:$0xff]  ;;  %v944_v21 = vld [vmem:[%s3428_s8 + $0x6a0] sm:$0xff] }
 0x300   :  { %v659_v56 = vpop.permute.xlu0 %658 }
 0x301   :  { %v661_v57 = vmul.f32 %v659_v56, %v656_v55  ;;  %v1678_v56 = vpack.c.bf16 %v741_v48, %v734_v46  ;;  %v867_v46 = vld [vmem:[%s3428_s8 + $0x438] sm:$0xff] }
 0x302   :  { %v875_v48 = vld [vmem:[%s3428_s8 + $0x478] sm:$0xff] }
 0x303   :  { %v662_v60 = vadd.f32 %v661_v57, %v2670_v47  ;;  %v1680_v57 = vpack.c.bf16 %v756_v53, %v749_v52  ;;  %v874_v53 = vld [vmem:[%s3428_s8 + $0x470] sm:$0xff] }
 0x305   :  { %691 = vperm.xlu1 %1850, %v662_v60   ;;  %666 = vperm.xlu0 %1849, %v662_v60   ;;  %v763_v60 = vld [vmem:[%s3428_s8 + $0xf8] sm:$0xff] }
 0x306   :  { %v1684_v63 = vpack.c.bf16 %v770_v61, %v763_v60  ;;  %v888_v61 = vld [vmem:[%s3428_s8 + $0x4e0] sm:$0xff] }
 0x309   :  { %1286 = vrot.lane.b32.xlu1 %v2670_v47, %s1881_s4  ;;  %1851 = vset.pattern.permute.xlu0 %v1879_v50  ;;  %v700_v47 = vsub.s32 3, %v2654_v31  ;;  %v673_v50 = vrot.slane %v663_v23, %v2657_v32 }
 0x30b   :  { %v701_v25 = vrot.slane %v663_v23, %v700_v47  ;;  %v683_v29 = vrot.slane %v673_v50, %v2657_v32  ;;  %v1698_v23 = vpack.c.bf16 %v811_v19, %v804_v18  ;;  %v825_v50 = vld [vmem:[%s3428_s8 + $0x2e8] sm:$0xff]  ;;  %v952_v18 = vld [vmem:[%s3428_s8 + $0x6e0] sm:$0xff] }
 0x30d   :  { %v711_v28 = vrot.slane %v701_v25, %v2663_v34  ;;  %v818_v25 = vld [vmem:[%s3428_s8 + $0x2b0] sm:$0xff] }
 0x384   :  { %v692_v35 = vpop.permute.xlu1 %691  ;;  %v667_v38 = vpop.permute.xlu0 %666 }
 0x385   :  { %v712_v39 = vmul.f32 %v707_v27, %v692_v35  ;;  %v713_v40 = vmul.f32 %v711_v28, %v692_v35  ;;  %v688_v41 = vmul.f32 %v683_v29, %v667_v38  ;;  %v689_v42 = vmul.f32 %v687_v30, %v667_v38  ;;  %v840_v27 = vld [vmem:[%s3428_s8 + $0x360] sm:$0xff]  ;;  %v847_v35 = vld [vmem:[%s3428_s8 + $0x398] sm:$0xff] }
 0x386   :  { %v1702_v28 = vpack.c.bf16 %v825_v50, %v818_v25  ;;  %v1704_v29 = vpack.c.bf16 %v840_v27, %v833_v26  ;;  %v832_v30 = vld [vmem:[%s3428_s8 + $0x320] sm:$0xff] }
 0x387   :  { %v714_v43 = vadd.f32 %v712_v39, %v688_v41  ;;  %v715_v44 = vadd.f32 %v713_v40, %v689_v42  ;;  %v846_v39 = vld [vmem:[%s3428_s8 + $0x390] sm:$0xff]  ;;  %v853_v40 = vld [vmem:[%s3428_s8 + $0x3c8] sm:$0xff]  ;;  %v868_v42 = vld [vmem:[%s3428_s8 + $0x440] sm:$0xff] }
 0x388   :  { %v1287_v45 = vpop.permute.xlu1 %1286  ;;  %v861_v41 = vld [vmem:[%s3428_s8 + $0x408] sm:$0xff]  ;;  %v744_v25 = vld [vmem:[%s3428_s8 + $0x60] sm:$0xff] }
 0x389   :  { %v728_v49 = vadd.f32 %v721_v36, %v714_v43  ;;  %v729_v51 = vadd.f32 %v725_v37, %v715_v44  ;;  %1289 = vst.msk [vmem:[%s3432_s12] sm:$0xff] %vm1283_vm1, %v1287_v45  ;;  %v854_v36 = vld [vmem:[%s3428_s8 + $0x3d0] sm:$0xff]  ;;  %v1706_v37 = vpack.c.bf16 %v839_v33, %v832_v30  ;;  %v1710_v43 = vpack.c.bf16 %v853_v40, %v846_v39  ;;  %v860_v45 = vld [vmem:[%s3428_s8 + $0x400] sm:$0xff] }
 0x38a   :  { %v1708_v38 = vpack.c.bf16 %v854_v36, %v847_v35  ;;  %v1712_v44 = vpack.c.bf16 %v868_v42, %v861_v41  ;;  %v736_v27 = vld [vmem:[%s3428_s8 + $0x20] sm:$0xff]  ;;  %v758_v30 = vld [vmem:[%s3428_s8 + $0xd0] sm:$0xff] }
 0x38b   :  { %v3017_v54 = vmax.f32 %v728_v49, 0.0  ;;  %v3019_v55 = vmax.f32 %v729_v51, 0.0  ;;  %v882_v49 = vld [vmem:[%s3428_s8 + $0x4b0] sm:$0xff]  ;;  %v1714_v51 = vpack.c.bf16 %v867_v46, %v860_v45  ;;  %v772_v39 = vld [vmem:[%s3428_s8 + $0x140] sm:$0xff] }
 0x38c   :  { %v1716_v52 = vpack.c.bf16 %v882_v49, %v875_v48  ;;  %v750_v36 = vld [vmem:[%s3428_s8 + $0x90] sm:$0xff]  ;;  %v764_v42 = vld [vmem:[%s3428_s8 + $0x100] sm:$0xff]  ;;  %v785_v49 = vld [vmem:[%s3428_s8 + $0x1a8] sm:$0xff] }
 0x38d   :  { %1057 = vmatprep.mubr.f32.mxu1 %v3019_v55  ;;  %1270 = vmatprep.mubr.f32.mxu0 %v3019_v55  ;;  %v786_v45 = vld [vmem:[%s3428_s8 + $0x1b0] sm:$0xff] }
 0x38e   :  { %1058 = vmatmul.mubr.f32.vlgmr.msra.gmra.mrb[2].mxu1 %v3017_v54  ;;  %1271 = vmatmul.mubr.f32.vlgmr.msra.gmra.mrb[2].mxu0 %v3017_v54  ;;  %v778_v48 = vld [vmem:[%s3428_s8 + $0x170] sm:$0xff] }
 0x38f   :  { %1679 = vmatpush1.bf16.msra.mxu1 %v1678_v56  ;;  %1128 = vmatprep.mubr.f32.mxu1 %v3019_v55  ;;  %v881_v56 = vld [vmem:[%s3428_s8 + $0x4a8] sm:$0xff] }
 0x390   :  { %1681 = vmatprep.subr.bf16.mxu1 %v1680_v57  ;;  %v889_v57 = vld [vmem:[%s3428_s8 + $0x4e8] sm:$0xff]  ;;  %v1718_v59 = vpack.c.bf16 %v881_v56, %v874_v53  ;;  %v1754_v53 = vpack.c.bf16 %v785_v49, %v778_v48 }
 0x391   :  { %v1720_v60 = vpack.c.bf16 %v896_v58, %v889_v57  ;;  %v792_v57 = vld [vmem:[%s3428_s8 + $0x1e0] sm:$0xff]  ;;  %v799_v58 = vld [vmem:[%s3428_s8 + $0x218] sm:$0xff] }
 0x393   :  { %1683 = vmatpush1.bf16.msra.mxu1 %v1682_v62  ;;  %v895_v62 = vld [vmem:[%s3428_s8 + $0x518] sm:$0xff] }
 0x394   :  { %1685 = vmatprep.subr.bf16.mxu1 %v1684_v63  ;;  %v903_v63 = vld [vmem:[%s3428_s8 + $0x558] sm:$0xff]  ;;  %v1722_v1 = vpack.c.bf16 %v895_v62, %v888_v61  ;;  %v1758_v61 = vpack.c.bf16 %v799_v58, %v792_v57 }
 0x395   :  { %v1724_v2 = vpack.c.bf16 %v910_v0, %v903_v63  ;;  %v806_v63 = vld [vmem:[%s3428_s8 + $0x250] sm:$0xff]  ;;  %v813_v0 = vld [vmem:[%s3428_s8 + $0x288] sm:$0xff] }
 0x397   :  { %1687 = vmatpush1.bf16.msra.mxu1 %v1686_v4  ;;  %v909_v4 = vld [vmem:[%s3428_s8 + $0x588] sm:$0xff] }
 0x398   :  { %1689 = vmatprep.subr.bf16.mxu1 %v1688_v5  ;;  %v917_v5 = vld [vmem:[%s3428_s8 + $0x5c8] sm:$0xff]  ;;  %v1726_v7 = vpack.c.bf16 %v909_v4, %v902_v3  ;;  %v1762_v3 = vpack.c.bf16 %v813_v0, %v806_v63 }
 0x399   :  { %v1728_v8 = vpack.c.bf16 %v924_v6, %v917_v5  ;;  %v820_v5 = vld [vmem:[%s3428_s8 + $0x2c0] sm:$0xff]  ;;  %v827_v6 = vld [vmem:[%s3428_s8 + $0x2f8] sm:$0xff] }
 0x39b   :  { %1691 = vmatpush1.bf16.msra.mxu1 %v1690_v10  ;;  %v923_v10 = vld [vmem:[%s3428_s8 + $0x5f8] sm:$0xff] }
 0x39c   :  { %1693 = vmatprep.subr.bf16.mxu1 %v1692_v11  ;;  %v931_v11 = vld [vmem:[%s3428_s8 + $0x638] sm:$0xff]  ;;  %v1730_v13 = vpack.c.bf16 %v923_v10, %v916_v9  ;;  %v1766_v9 = vpack.c.bf16 %v827_v6, %v820_v5  ;;  %v984_v5 = vsub.s32 6, %v2654_v31 }
 0x39d   :  { %v1732_v14 = vpack.c.bf16 %v938_v12, %v931_v11  ;;  %v834_v11 = vld [vmem:[%s3428_s8 + $0x330] sm:$0xff]  ;;  %v841_v12 = vld [vmem:[%s3428_s8 + $0x368] sm:$0xff] }
 0x39f   :  { %1695 = vmatpush1.bf16.msra.mxu1 %v1694_v16  ;;  %v937_v16 = vld [vmem:[%s3428_s8 + $0x668] sm:$0xff] }
 0x3a0   :  { %1697 = vmatprep.subr.bf16.mxu1 %v1696_v17  ;;  %v945_v17 = vld [vmem:[%s3428_s8 + $0x6a8] sm:$0xff]  ;;  %v1734_v19 = vpack.c.bf16 %v937_v16, %v930_v15  ;;  %v1770_v15 = vpack.c.bf16 %v841_v12, %v834_v11 }
 0x3a1   :  { %v1736_v20 = vpack.c.bf16 %v952_v18, %v945_v17  ;;  %v848_v17 = vld [vmem:[%s3428_s8 + $0x3a0] sm:$0xff]  ;;  %v855_v18 = vld [vmem:[%s3428_s8 + $0x3d8] sm:$0xff] }
 0x3a3   :  { %1699 = vmatpush1.bf16.msra.mxu1 %v1698_v23  ;;  %v951_v23 = vld [vmem:[%s3428_s8 + $0x6d8] sm:$0xff] }
 0x3a4   :  { %1701 = vmatprep.subr.bf16.mxu1 %v1700_v24  ;;  %v737_v24 = vld [vmem:[%s3428_s8 + $0x28] sm:$0xff]  ;;  %v1738_v50 = vpack.c.bf16 %v951_v23, %v944_v21  ;;  %v1774_v21 = vpack.c.bf16 %v855_v18, %v848_v17 }
 0x3a5   :  { %v1740_v26 = vpack.c.bf16 %v744_v25, %v737_v24  ;;  %v862_v24 = vld [vmem:[%s3428_s8 + $0x410] sm:$0xff]  ;;  %v869_v25 = vld [vmem:[%s3428_s8 + $0x448] sm:$0xff] }
 0x3a7   :  { %1703 = vmatpush1.bf16.msra.mxu1 %v1702_v28  ;;  %v743_v28 = vld [vmem:[%s3428_s8 + $0x58] sm:$0xff] }
 0x3a8   :  { %1705 = vmatprep.subr.bf16.mxu1 %v1704_v29  ;;  %v751_v29 = vld [vmem:[%s3428_s8 + $0x98] sm:$0xff]  ;;  %v1742_v33 = vpack.c.bf16 %v743_v28, %v736_v27  ;;  %v1778_v27 = vpack.c.bf16 %v869_v25, %v862_v24 }
 0x3a9   :  { %v1744_v35 = vpack.c.bf16 %v758_v30, %v751_v29  ;;  %v876_v29 = vld [vmem:[%s3428_s8 + $0x480] sm:$0xff]  ;;  %v883_v30 = vld [vmem:[%s3428_s8 + $0x4b8] sm:$0xff] }
 0x3ab   :  { %1707 = vmatpush1.bf16.msra.mxu1 %v1706_v37  ;;  %v757_v37 = vld [vmem:[%s3428_s8 + $0xc8] sm:$0xff] }
 0x3ac   :  { %1709 = vmatprep.subr.bf16.mxu1 %v1708_v38  ;;  %v765_v38 = vld [vmem:[%s3428_s8 + $0x108] sm:$0xff]  ;;  %v1746_v40 = vpack.c.bf16 %v757_v37, %v750_v36  ;;  %v1782_v36 = vpack.c.bf16 %v883_v30, %v876_v29 }
 0x3ad   :  { %v1748_v41 = vpack.c.bf16 %v772_v39, %v765_v38  ;;  %v890_v38 = vld [vmem:[%s3428_s8 + $0x4f0] sm:$0xff]  ;;  %v897_v39 = vld [vmem:[%s3428_s8 + $0x528] sm:$0xff] }
 0x3af   :  { %1711 = vmatpush1.bf16.msra.mxu1 %v1710_v43  ;;  %v771_v43 = vld [vmem:[%s3428_s8 + $0x138] sm:$0xff] }
 0x3b0   :  { %1713 = vmatprep.subr.bf16.mxu1 %v1712_v44  ;;  %v779_v44 = vld [vmem:[%s3428_s8 + $0x178] sm:$0xff] }
 0x3b1   :  { %v1752_v46 = vpack.c.bf16 %v786_v45, %v779_v44  ;;  %v904_v44 = vld [vmem:[%s3428_s8 + $0x560] sm:$0xff]  ;;  %v911_v45 = vld [vmem:[%s3428_s8 + $0x598] sm:$0xff] }
 0x3b2   :  { %v1790_v48 = vpack.c.bf16 %v911_v45, %v904_v44 }
 0x3b3   :  { %1715 = vmatpush1.bf16.msra.mxu1 %v1714_v51  ;;  %v793_v51 = vld [vmem:[%s3428_s8 + $0x1e8] sm:$0xff] }
 0x3b4   :  { %1717 = vmatprep.subr.bf16.mxu1 %v1716_v52  ;;  %v800_v52 = vld [vmem:[%s3428_s8 + $0x220] sm:$0xff] }
 0x3b5   :  { %v1756_v56 = vpack.c.bf16 %v800_v52, %v793_v51  ;;  %v918_v51 = vld [vmem:[%s3428_s8 + $0x5d0] sm:$0xff]  ;;  %v925_v52 = vld [vmem:[%s3428_s8 + $0x608] sm:$0xff] }
 0x3b6   :  { %v1794_v57 = vpack.c.bf16 %v925_v52, %v918_v51 }
 0x3b7   :  { %1719 = vmatpush1.bf16.msra.mxu1 %v1718_v59  ;;  %v807_v59 = vld [vmem:[%s3428_s8 + $0x258] sm:$0xff] }
 0x3b8   :  { %1721 = vmatprep.subr.bf16.mxu1 %v1720_v60  ;;  %v814_v60 = vld [vmem:[%s3428_s8 + $0x290] sm:$0xff] }
 0x3b9   :  { %v1760_v62 = vpack.c.bf16 %v814_v60, %v807_v59  ;;  %v932_v59 = vld [vmem:[%s3428_s8 + $0x640] sm:$0xff]  ;;  %v939_v60 = vld [vmem:[%s3428_s8 + $0x678] sm:$0xff] }
 0x3ba   :  { %v1798_v63 = vpack.c.bf16 %v939_v60, %v932_v59 }
 0x3bb   :  { %1723 = vmatpush1.bf16.msra.mxu1 %v1722_v1  ;;  %v821_v1 = vld [vmem:[%s3428_s8 + $0x2c8] sm:$0xff] }
 0x3bc   :  { %1725 = vmatprep.subr.bf16.mxu1 %v1724_v2  ;;  %v828_v2 = vld [vmem:[%s3428_s8 + $0x300] sm:$0xff] }
 0x3bd   :  { %v1764_v4 = vpack.c.bf16 %v828_v2, %v821_v1  ;;  %v946_v1 = vld [vmem:[%s3428_s8 + $0x6b0] sm:$0xff]  ;;  %v953_v2 = vld [vmem:[%s3428_s8 + $0x6e8] sm:$0xff] }
 0x3bf   :  { %1727 = vmatpush1.bf16.msra.mxu1 %v1726_v7  ;;  %v835_v7 = vld [vmem:[%s3428_s8 + $0x338] sm:$0xff] }
 0x3c0   :  { %1729 = vmatprep.subr.bf16.mxu1 %v1728_v8  ;;  %v842_v8 = vld [vmem:[%s3428_s8 + $0x370] sm:$0xff] }
 0x3c1   :  { %v1768_v10 = vpack.c.bf16 %v842_v8, %v835_v7 }
 0x3c3   :  { %1731 = vmatpush1.bf16.msra.mxu1 %v1730_v13  ;;  %v849_v13 = vld [vmem:[%s3428_s8 + $0x3a8] sm:$0xff] }
 0x3c4   :  { %1733 = vmatprep.subr.bf16.mxu1 %v1732_v14  ;;  %v856_v14 = vld [vmem:[%s3428_s8 + $0x3e0] sm:$0xff] }
 0x3c5   :  { %v1772_v16 = vpack.c.bf16 %v856_v14, %v849_v13 }
 0x3c7   :  { %1735 = vmatpush1.bf16.msra.mxu1 %v1734_v19  ;;  %v863_v19 = vld [vmem:[%s3428_s8 + $0x418] sm:$0xff] }
 0x3c8   :  { %1737 = vmatprep.subr.bf16.mxu1 %v1736_v20  ;;  %v870_v20 = vld [vmem:[%s3428_s8 + $0x450] sm:$0xff] }
 0x3c9   :  { %v1776_v23 = vpack.c.bf16 %v870_v20, %v863_v19  ;;  %v976_v20 = vsub.s32 4, %v2654_v31 }
 0x3cb   :  { %1739 = vmatpush1.bf16.msra.mxu1 %v1738_v50  ;;  %v877_v50 = vld [vmem:[%s3428_s8 + $0x488] sm:$0xff] }
 0x3cc   :  { %1741 = vmatprep.subr.bf16.mxu1 %v1740_v26  ;;  %v884_v26 = vld [vmem:[%s3428_s8 + $0x4c0] sm:$0xff] }
 0x3cd   :  { %v1780_v28 = vpack.c.bf16 %v884_v26, %v877_v50 }
 0x3ce   :  { %1129 = vmatmul.mubr.f32.vlgmr.msra.gmra.mrb[4].mxu1 %v3017_v54 }
 0x3cf   :  { %1743 = vmatpush1.bf16.msra.mxu1 %v1742_v33  ;;  %1199 = vmatprep.mubr.f32.mxu1 %v3019_v55  ;;  %v1750_v55 = vpack.c.bf16 %v771_v43, %v764_v42  ;;  %v891_v33 = vld [vmem:[%s3428_s8 + $0x4f8] sm:$0xff]  ;;  %v1786_v42 = vpack.c.bf16 %v897_v39, %v890_v38 }
 0x3d0   :  { %1745 = vmatprep.subr.bf16.mxu1 %v1744_v35  ;;  %v898_v35 = vld [vmem:[%s3428_s8 + $0x530] sm:$0xff] }
 0x3d1   :  { %v1784_v37 = vpack.c.bf16 %v898_v35, %v891_v33 }
 0x3d3   :  { %1747 = vmatpush1.bf16.msra.mxu1 %v1746_v40  ;;  %v905_v40 = vld [vmem:[%s3428_s8 + $0x568] sm:$0xff] }
 0x3d4   :  { %1749 = vmatprep.subr.bf16.mxu1 %v1748_v41  ;;  %v912_v41 = vld [vmem:[%s3428_s8 + $0x5a0] sm:$0xff] }
 0x3d5   :  { %v1788_v43 = vpack.c.bf16 %v912_v41, %v905_v40 }
 0x3d7   :  { %1751 = vmatpush1.bf16.msra.mxu1 %v1750_v55  ;;  %v919_v55 = vld [vmem:[%s3428_s8 + $0x5d8] sm:$0xff] }
 0x3d8   :  { %1753 = vmatprep.subr.bf16.mxu1 %v1752_v46  ;;  %v926_v46 = vld [vmem:[%s3428_s8 + $0x610] sm:$0xff] }
 0x3d9   :  { %v1792_v49 = vpack.c.bf16 %v926_v46, %v919_v55 }
 0x3db   :  { %1755 = vmatpush1.bf16.msra.mxu1 %v1754_v53  ;;  %v933_v53 = vld [vmem:[%s3428_s8 + $0x648] sm:$0xff] }
 0x3dc   :  { %1757 = vmatprep.subr.bf16.mxu1 %v1756_v56  ;;  %v940_v56 = vld [vmem:[%s3428_s8 + $0x680] sm:$0xff] }
 0x3dd   :  { %v1796_v58 = vpack.c.bf16 %v940_v56, %v933_v53 }
 0x3df   :  { %1759 = vmatpush1.bf16.msra.mxu1 %v1758_v61  ;;  %v947_v61 = vld [vmem:[%s3428_s8 + $0x6b8] sm:$0xff] }
 0x3e0   :  { %1761 = vmatprep.subr.bf16.mxu1 %v1760_v62  ;;  %v954_v62 = vld [vmem:[%s3428_s8 + $0x6f0] sm:$0xff]  ;;  %s1882_s8 = smov [#allocation2]  }
 0x3e1   :  { %v1800_v0 = vpack.c.bf16 %v954_v62, %v947_v61 }
 0x3e3   :  { %1763 = vmatpush1.bf16.msra.mxu1 %v1762_v3  ;;  %v1802_v3 = vpack.c.bf16 %v953_v2, %v946_v1 }
 0x3e4   :  { %1765 = vmatprep.subr.bf16.mxu1 %v1764_v4  ;;  %v956_v4 = vld [vmem:[%s3429_s9] sm:$0x7f]  ;;  %s1296_s9 = sshll.u32 %s1882_s8, 4  ;;  %s1297_s9 = int_to_ptr.vmem [resolvable:$true] %s1296_s9 }
 0x3e5   :  { %v961_v6 = vrot.slane %v956_v4, %v2657_v32  ;;  %v965_v7 = vrot.slane %v956_v4, %v2663_v34  ;;  %v973_v32 = vrot.slane %v956_v4, %v700_v47  ;;  %s1854_s7 = scalar_lea.vmem %s1297_s9, 896  ;;  %p1859_p1 = scmp.lt.s32.totalorder %s1297_s9, %s1297_s9 }
 0x3e6   :  { %p1855_p0 = scmp.ne.s32.totalorder %s1297_s9, %s1854_s7  ;;  %p1860_p2 = scmp.lt.s32.totalorder %s1854_s7, %s1854_s7 }
 0x3e7   :  { %1767 = vmatpush1.bf16.msra.mxu1 %v1766_v9 }
 0x3e8   :  { %1769 = vmatprep.subr.bf16.mxu1 %v1768_v10  ;;  %v985_v10 = vrot.slane %v956_v4, %v984_v5  ;;  %p1861_p3 = por %p1860_p2, %p1859_p1 }
 0x3ea   :  { %p1862_p4 = pnand %p1861_p3, %p1855_p0 }
 0x3eb   :  { %1771 = vmatpush1.bf16.msra.mxu1 %v1770_v15 }
 0x3ec   :  { %1773 = vmatprep.subr.bf16.mxu1 %v1772_v16  ;;  %v969_v16 = vrot.slane %v956_v4, %v676_v22 }
 0x3ef   :  { %1775 = vmatpush1.bf16.msra.mxu1 %v1774_v21  ;;  %v980_v21 = vsub.s32 5, %v2654_v31 }
 0x3f0   :  { %1777 = vmatprep.subr.bf16.mxu1 %v1776_v23  ;;  %v977_v23 = vrot.slane %v956_v4, %v976_v20 }
 0x3f1   :  { %v981_v24 = vrot.slane %v956_v4, %v980_v21 }
 0x3f3   :  { %1779 = vmatpush1.bf16.msra.mxu1 %v1778_v27 }
 0x3f4   :  { %1781 = vmatprep.subr.bf16.mxu1 %v1780_v28 }
 0x3f7   :  { %1783 = vmatpush1.bf16.msra.mxu1 %v1782_v36 }
 0x3f8   :  { %1785 = vmatprep.subr.bf16.mxu1 %v1784_v37 }
 0x3fb   :  { %1787 = vmatpush1.bf16.msra.mxu1 %v1786_v42 }
 0x3fc   :  { %1789 = vmatprep.subr.bf16.mxu1 %v1788_v43 }
 0x3ff   :  { %1791 = vmatpush1.bf16.msra.mxu1 %v1790_v48 }
 0x400   :  { %1793 = vmatprep.subr.bf16.mxu1 %v1792_v49 }
 0x403   :  { %1795 = vmatpush1.bf16.msra.mxu1 %v1794_v57 }
 0x404   :  { %1797 = vmatprep.subr.bf16.mxu1 %v1796_v58 }
 0x407   :  { %1799 = vmatpush1.bf16.msra.mxu1 %v1798_v63 }
 0x408   :  { %1801 = vmatprep.subr.bf16.mxu1 %v1800_v0 }
 0x40b   :  { %1803 = vmatpush1.bf16.msra.mxu1 %v1802_v3 }
 0x40e   :  { %1200 = vmatmul.mubr.f32.vlgmr.msra.gmra.mrb[6].mxu1 %v3017_v54 }
 0x461   :  { %v1059_v8 = vpop.f32.mrb[2].mxu1  ;;  %v1381_v9 = vpop.f32.mrb[2].mxu0 }
 0x462   :  { %v1060_v11 = vadd.f32 %v1059_v8, %v961_v6  ;;  %v1061_v12 = vpop.f32.mrb[3].mxu1  ;;  %v1382_v13 = vpop.f32.mrb[3].mxu0 }
 0x463   :  { %v1062_v14 = vadd.f32 %v1061_v12, %v965_v7  ;;  %v1383_v15 = vadd.f32 %v1382_v13, %v1381_v9 }
 0x464   :  { %1276 = vst [vmem:[#allocation2] sm:$0xff] %v1060_v11 }
 0x465   :  { %1277 = vst [vmem:[#allocation2 + $0x8] sm:$0xff] %v1062_v14  ;;  %v1273_v54 = vadd.f32 %v1383_v15, %v985_v10 }
 0x467   :  { %1282 = vst.msk [vmem:[#allocation2 + $0x30] sm:$0xff] %vm254_vm0, %v1273_v54 }
 0x4a1   :  { %v1130_v34 = vpop.f32.mrb[4].mxu1 }
 0x4a2   :  { %v1131_v17 = vadd.f32 %v1130_v34, %v969_v16  ;;  %v1132_v18 = vpop.f32.mrb[5].mxu1 }
 0x4a3   :  { %v1133_v19 = vadd.f32 %v1132_v18, %v973_v32 }
 0x4a4   :  { %1278 = vst [vmem:[#allocation2 + $0x10] sm:$0xff] %v1131_v17 }
 0x4a5   :  { %1279 = vst [vmem:[#allocation2 + $0x18] sm:$0xff] %v1133_v19 }
 0x4e1   :  { %v1201_v25 = vpop.f32.mrb[6].mxu1 }
 0x4e2   :  { %v1202_v50 = vadd.f32 %v1201_v25, %v977_v23  ;;  %v1203_v22 = vpop.f32.mrb[7].mxu1 }
 0x4e3   :  { %v1204_v26 = vadd.f32 %v1203_v22, %v981_v24 }
 0x4e4   :  { %1280 = vst [vmem:[#allocation2 + $0x20] sm:$0xff] %v1202_v50 }
 0x4e5   :  { %1281 = vst [vmem:[#allocation2 + $0x28] sm:$0xff] %v1204_v26 }
 0x4e6   :  { %1865 = shalt.err (!%p1862_p4)
}
 0x4e7   :  { %s1866_s23 = scalar_lea.hbm %s3430_s10, 896 }
 0x4e8   :  { %p1867_p5 = scmp.ne.s32.totalorder %s3430_s10, %s1866_s23  ;;  %p1870_p6 = scmp.lt.u32.totalorder %s1866_s23, %s3430_s10 }
 0x4ea   :  { %p1872_p7 = pnand %p1870_p6, %p1867_p5 }
 0x4ec   :  { %1875 = shalt.err (!%p1872_p7)
}
 0x4ed   :  { %1299 = dma.vmem_to_hbm [thread:$0]  %s1297_s9, 896, %s3430_s10, [#allocation3]  }
 0x4ee   :  { %1876 = dma.done.wait [#allocation3], 896  }
 0x4ef   :  { %1877 = vsyncadd [#allocation3], 4294966400 }
 0x4f0   :  { %1311 = vsyncpa [#allocation3], 1 }

</bundles_post_ra>
